<compile_context>
chip_gen: v7x
topology: tpu7x:2x2x1
jax: 0.10.0
libtpu: 0.0.40
codegen_flags: <defaults>
</compile_context>

<pallas_src>
import functools
import math

import jax
import jax.numpy as jnp
from jax import lax
from jax.experimental import pallas as pl
from jax.experimental.pallas import tpu as pltpu

LANE = 128  # readout / upper-dense dims are zero-padded to this lane width


# ---------------------------------------------------------------------------
# In-kernel math helpers
# ---------------------------------------------------------------------------

# f32 rational approximation of erf (same family XLA uses on TPU), mul/add/reciprocal
# only so it always lowers in Mosaic.  Used for exact (erf-based) GELU like nn.GELU.
_ERF_ALPHA = (0.00022905065861350646, 0.0034082910107109506,
              0.050955695062380861, 0.18520832239976145, 1.128379143519084)
_ERF_BETA = (-1.1791602954361697e-7, 0.000023547966471313185,
             0.0010179625278914885, 0.014070470171167667,
             0.11098505178285362, 0.49746925110067538, 1.0)


def _poly(x, coeffs):
    acc = jnp.zeros_like(x)
    for c in coeffs:
        acc = acc * x + jnp.float32(c)
    return acc


def _erf(x):
    x = jnp.clip(x, -4.0, 4.0)
    x2 = x * x
    # divide -> EUP approx reciprocal (VALU stays free for the polynomial)
    return x * _poly(x2, _ERF_ALPHA) * pl.reciprocal(_poly(x2, _ERF_BETA), approx=True)


def _gelu_exact(x):
    return 0.5 * x * (1.0 + _erf(x * jnp.float32(1.0 / math.sqrt(2.0))))


def _ln(x, g, b, eps):
    """LayerNorm over the last axis.  x: (rows, D) f32; g, b: (1, D) f32."""
    mu = jnp.mean(x, axis=-1, keepdims=True)
    xc = x - mu
    var = jnp.mean(xc * xc, axis=-1, keepdims=True)
    return xc * lax.rsqrt(var + eps) * g + b


def _bf16(x):
    return x.astype(jnp.bfloat16)


# ---------------------------------------------------------------------------
# The fused ViT + dense-head kernel.  grid = (batch,)
# ---------------------------------------------------------------------------

def _vit_fused_kernel(
    # ---- inputs ----
    tok_ref,       # (n, patch_dim)   f32   patches of this image
    emb_ln_ref,    # (2, patch_dim)   f32   [pe_ln1_gamma, pe_ln1_beta]
    pe_w_ref,      # (patch_dim, dim) bf16  patch-embed Linear weight (torch W.T)
    vec_ref,       # (6, dim)         f32   [pe_b, pe_ln2_g, pe_ln2_b, cls+pos0, fin_g, fin_b]
    pos_ref,       # (n, dim)         f32   positional embedding for patch rows (pos[1:])
    blk_vec_ref,   # (depth, 6, dim)  f32   [attn_g, attn_b, out_b, ff_g, ff_b, ff_b2]
    qk_w_ref,      # (depth, dim, 2*inner) bf16  [Wq | Wk], head-major columns
    vo_w_ref,      # (depth, dim, heads*dim) bf16  per-head folded Wv_h @ Wo_h, head-major
    ff_w1_ref,     # (depth, dim, mlp) bf16
    ff_b1_ref,     # (depth, 1, mlp)   f32
    ff_w2_ref,     # (depth, mlp, dim) bf16
    head_w_ref,    # (dim, LANE)       bf16  ViT readout head, zero-padded lanes
    dense_w_ref,   # (3, LANE, LANE)   bf16  upper dense stack, zero-padded
    tail_b_ref,    # (4, LANE)         f32   [head_b, d1_b, d2_b, d3_b], zero-padded
    # ---- output ----
    out_ref,       # (1, LANE)         f32   (latent features live in lanes [:lat])
    # ---- scratch ----
    t_scr,         # (seq, dim)        f32   token assembly buffer
    *, seq, dim, heads, dh, depth, scale, eps):

    inner = heads * dh
    n = seq - 1

    vec = vec_ref[...]
    pe_b, pe2_g, pe2_b = vec[0:1], vec[1:2], vec[2:3]
    cls_pos, fin_g, fin_b = vec[3:4], vec[4:5], vec[5:6]

    # -------- patch embedding: LN -> Linear -> LN on patch rows only --------
    eln = emb_ln_ref[...]
    e = _ln(tok_ref[...], eln[0:1], eln[1:2], eps)
    e = jnp.dot(_bf16(e), pe_w_ref[...], preferred_element_type=jnp.float32) + pe_b
    e = _ln(e, pe2_g, pe2_b, eps)                              # (n, dim)

    # row 0 <- cls_token + pos[0] (host-folded constant); rows 1.. <- patches + pos[1:]
    t_scr[0:1, :] = cls_pos
    t_scr[1:seq, :] = e + pos_ref[...]
    t0 = t_scr[...]                                            # (seq, dim) f32

    # -------- transformer blocks: unrolled in-kernel depth loop --------
    def block(d, t):
        bv = blk_vec_ref[d]                                    # (6, dim) f32
        a_g, a_b, o_b = bv[0:1], bv[1:2], bv[2:3]
        f_g, f_b, f_b2 = bv[3:4], bv[4:5], bv[5:6]

        # pre-norm multi-head self-attention (to_qkv has no bias)
        xn = _bf16(_ln(t, a_g, a_b, eps))
        qk = jnp.dot(xn, qk_w_ref[d], preferred_element_type=jnp.float32)  # (seq, 2*inner)
        vo = jnp.dot(xn, vo_w_ref[d], preferred_element_type=jnp.float32)  # (seq, heads*dim)
        acc = jnp.zeros((seq, dim), jnp.float32)
        for h in range(heads):
            q = qk[:, h * dh:(h + 1) * dh]
            k = qk[:, inner + h * dh:inner + (h + 1) * dh]
            s = lax.dot_general(_bf16(q), _bf16(k), (((1,), (1,)), ((), ())),
                                preferred_element_type=jnp.float32) * scale  # (seq, seq)
            p = jnp.exp(s - jnp.max(s, axis=-1, keepdims=True))
            p = p * pl.reciprocal(jnp.sum(p, axis=-1, keepdims=True), approx=True)
            acc = acc + jnp.dot(_bf16(p), _bf16(vo[:, h * dim:(h + 1) * dim]),
                                preferred_element_type=jnp.float32)
        t = t + acc + o_b

        # pre-norm feed-forward (erf-exact GELU, matching nn.GELU default)
        xn = _bf16(_ln(t, f_g, f_b, eps))
        hmid = _gelu_exact(jnp.dot(xn, ff_w1_ref[d], preferred_element_type=jnp.float32)
                           + ff_b1_ref[d])
        t = t + jnp.dot(_bf16(hmid), ff_w2_ref[d],
                        preferred_element_type=jnp.float32) + f_b2
        return t

    t = lax.fori_loop(0, depth, block, t0, unroll=True)

    # -------- final LN (cls row only) + readout + upper dense stack --------
    # Final LN is row-wise, so LN(x)[0] == LN(x[0]): normalize only the cls row.
    c = _bf16(_ln(t[0:1, :], fin_g, fin_b, eps))               # (1, dim)
    tb = tail_b_ref[...]                                        # (4, LANE)
    y = jnp.dot(c, head_w_ref[...], preferred_element_type=jnp.float32) + tb[0:1]
    y = jnp.maximum(jnp.dot(_bf16(y), dense_w_ref[0],
                            preferred_element_type=jnp.float32) + tb[1:2], 0.0)
    y = jnp.maximum(jnp.dot(_bf16(y), dense_w_ref[1],
                            preferred_element_type=jnp.float32) + tb[2:3], 0.0)
    y = jnp.dot(_bf16(y), dense_w_ref[2], preferred_element_type=jnp.float32) + tb[3:4]
    out_ref[...] = y.astype(out_ref.dtype)                      # lane-dense (1, 128) store


# ---------------------------------------------------------------------------
# Parameter construction (deterministic, synthetic, kernel layout)
# ---------------------------------------------------------------------------

def _pad_to(a, shape):
    return jnp.pad(a, [(0, t - s) for s, t in zip(a.shape, shape)])


def init_params(key, cfg):
    keys = iter(jax.random.split(key, 32))

    def w(shape, scale=0.02):
        return jax.random.normal(next(keys), shape, jnp.float32) * scale

    dim = cfg["dim"]
    heads, dh = cfg["heads"], cfg["dim_head"]
    inner = heads * dh
    depth = cfg["depth"]
    mlp = cfg["mlp_dim"]
    patch_dim = cfg["patch_size"] ** 2 * cfg["channels"]
    n = (cfg["image_size"] // cfg["patch_size"]) ** 2
    seq = n + 1
    ro, du, lat = cfg["readout_dim"], cfg["dense_units"], cfg["latent_dim"]
    assert max(ro, du, lat) <= LANE, "tail dims are zero-padded to a single 128-lane tile"

    # patch-embed LN1 gamma/beta, stacked
    emb_ln = jnp.stack([jnp.ones((patch_dim,)), jnp.zeros((patch_dim,))]).astype(jnp.float32)
    pe_w = _bf16(w((patch_dim, dim)))

    cls_token = w((dim,), 1.0)
    pos = w((seq, dim), 1.0)
    # [pe_bias, pe_ln2_g, pe_ln2_b, cls_token + pos[0] (folded), final_ln_g, final_ln_b]
    vec = jnp.stack([jnp.zeros((dim,)), jnp.ones((dim,)), jnp.zeros((dim,)),
                     cls_token + pos[0], jnp.ones((dim,)), jnp.zeros((dim,))]
                    ).astype(jnp.float32)
    pos_patch = pos[1:]                                            # (n, dim)

    # per-block LN gammas/betas + biases: [attn_g, attn_b, out_b, ff_g, ff_b, ff_b2]
    blk_vec = jnp.stack([jnp.ones((depth, dim)), jnp.zeros((depth, dim)),
                         jnp.zeros((depth, dim)), jnp.ones((depth, dim)),
                         jnp.zeros((depth, dim)), jnp.zeros((depth, dim))],
                        axis=1).astype(jnp.float32)                # (depth, 6, dim)

    # to_qkv (bias-free), torch layout transposed: (depth, dim, 3*inner) = [q | k | v],
    # head-major within each chunk.
    qkv = w((depth, dim, 3 * inner))
    wq, wk, wv = qkv[..., :inner], qkv[..., inner:2 * inner], qkv[..., 2 * inner:]
    qk_w = _bf16(jnp.concatenate([wq, wk], axis=-1))               # (depth, dim, 2*inner)
    # out projection, torch layout transposed: (depth, inner, dim); fold Wv_h @ Wo_h per
    # head on the host (attention is linear in V) -> (depth, dim, heads*dim), head-major.
    wo = w((depth, inner, dim))
    wv_h = wv.reshape(depth, dim, heads, dh)
    wo_h = wo.reshape(depth, heads, dh, dim)
    vo_w = _bf16(jnp.einsum("ldhk,lhkm->ldhm", wv_h, wo_h)
                 .reshape(depth, dim, heads * dim))

    ff_w1 = _bf16(w((depth, dim, mlp)))
    ff_b1 = jnp.zeros((depth, 1, mlp), jnp.float32)
    ff_w2 = _bf16(w((depth, mlp, dim)))

    # readout head + upper dense stack, zero-padded to 128 lanes (padding stays exactly 0
    # through relu, so slicing the first `lat` lanes at the end is exact).
    head_w = _bf16(_pad_to(w((dim, ro)), (dim, LANE)))
    d1_w = _pad_to(w((ro, du)), (LANE, LANE))
    d2_w = _pad_to(w((du, du)), (LANE, LANE))
    d3_w = _pad_to(w((du, lat)), (LANE, LANE))
    dense_w = _bf16(jnp.stack([d1_w, d2_w, d3_w]))                 # (3, LANE, LANE)
    tail_b = jnp.zeros((4, LANE), jnp.float32)                     # [head_b, d1_b, d2_b, d3_b]

    return dict(emb_ln=emb_ln, pe_w=pe_w, vec=vec, pos=pos_patch, blk_vec=blk_vec,
                qk_w=qk_w, vo_w=vo_w, ff_w1=ff_w1, ff_b1=ff_b1, ff_w2=ff_w2,
                head_w=head_w, dense_w=dense_w, tail_b=tail_b)


def _bf16_host(x):
    return x.astype(jnp.bfloat16)


# keep a single name used both host- and kernel-side
_bf16 = _bf16_host if False else _bf16  # noqa: F811  (same function, clarity only)


# ---------------------------------------------------------------------------
# Forward pass: patch rearrange in XLA, everything else in one Pallas kernel
# ---------------------------------------------------------------------------

def implicit_vit_kernel_forward(params, x, cfg):
    B, C, H, W = x.shape
    ps = cfg["patch_size"]
    gh, gw = H // ps, W // ps
    n = gh * gw
    seq = n + 1
    dim = cfg["dim"]
    heads, dh = cfg["heads"], cfg["dim_head"]
    mlp = cfg["mlp_dim"]
    depth = cfg["depth"]
    patch_dim = ps * ps * C
    lat = cfg["latent_dim"]
    inner = heads * dh

    # einops 'b c (h p1) (w p2) -> b (h w) (p1 p2 c)'
    patches = (x.reshape(B, C, gh, ps, gw, ps)
                .transpose(0, 2, 4, 3, 5, 1)
                .reshape(B, n, patch_dim))

    kern = functools.partial(_vit_fused_kernel, seq=seq, dim=dim, heads=heads, dh=dh,
                             depth=depth, scale=dh ** -0.5, eps=1e-5)

    def full(nd):                       # resident full-array blocks (weights)
        return lambda i: (0,) * nd

    in_specs = [
        pl.BlockSpec((None, n, patch_dim), lambda i: (i, 0, 0)),   # patches (per image)
        pl.BlockSpec((2, patch_dim), full(2)),                     # emb_ln
        pl.BlockSpec((patch_dim, dim), full(2)),                   # pe_w
        pl.BlockSpec((6, dim), full(2)),                           # vec
        pl.BlockSpec((n, dim), full(2)),                           # pos (patch rows)
        pl.BlockSpec((depth, 6, dim), full(3)),                    # blk_vec
        pl.BlockSpec((depth, dim, 2 * inner), full(3)),            # qk_w
        pl.BlockSpec((depth, dim, heads * dim), full(3)),          # vo_w
        pl.BlockSpec((depth, dim, mlp), full(3)),                  # ff_w1
        pl.BlockSpec((depth, 1, mlp), full(3)),                    # ff_b1
        pl.BlockSpec((depth, mlp, dim), full(3)),                  # ff_w2
        pl.BlockSpec((dim, LANE), full(2)),                        # head_w
        pl.BlockSpec((3, LANE, LANE), full(3)),                    # dense_w
        pl.BlockSpec((4, LANE), full(2)),                          # tail_b
    ]

    out = pl.pallas_call(
        kern,
        out_shape=jax.ShapeDtypeStruct((B, 1, LANE), jnp.float32),
        grid=(B,),
        in_specs=in_specs,
        out_specs=pl.BlockSpec((None, 1, LANE), lambda i: (i, 0, 0)),
        scratch_shapes=[pltpu.VMEM((seq, dim), jnp.float32)],
        compiler_params=pltpu.CompilerParams(
            dimension_semantics=("parallel",)),
    )(patches, params["emb_ln"], params["pe_w"], params["vec"], params["pos"],
      params["blk_vec"], params["qk_w"], params["vo_w"], params["ff_w1"],
      params["ff_b1"], params["ff_w2"], params["head_w"], params["dense_w"],
      params["tail_b"])

    return out[:, 0, :lat]                                         # (B, latent_feature_dim)


# ---------------------------------------------------------------------------
# Main
# ---------------------------------------------------------------------------

if __name__ == "__main__":
    # Small, forward-consistent configuration of ImplicitViTKernel.
    cfg = dict(
        image_size=16,        # input_width == input_height == 16
        channels=3,
        patch_size=8,         # 16 % 8 == 0 -> 4 patches, patch_dim = 192
        dim=64,               # last_linear_dim
        depth=2,              # num_blocks
        heads=2,
        dim_head=64,          # vit-pytorch default
        mlp_dim=128,
        readout_dim=64,       # readout_layer_dim (ViT num_classes)
        dense_units=64,       # num_upper_dense_units
        latent_dim=32,        # latent_feature_dim
    )
    # TODO(synk): dropout / emb_dropout layers are identity here (inference mode);
    # training-mode stochastic dropout is not implemented.

    root = jax.random.PRNGKey(0)
    pkey, xkey = jax.random.split(root)
    params = init_params(pkey, cfg)
    x = jax.random.normal(
        xkey, (2, cfg["channels"], cfg["image_size"], cfg["image_size"]), jnp.float32)

    fwd = jax.jit(functools.partial(implicit_vit_kernel_forward, cfg=cfg))
    out = jax.block_until_ready(fwd(params, x))
    assert out.shape == (2, cfg["latent_dim"]) and out.dtype == jnp.float32
    print("KERNEL_OK")
</pallas_src>

<mosaic_0001>
module attributes {stable_mosaic.version = 11 : i64} {
  func.func @_vit_fused_kernel(%arg0: i32, %arg1: memref<1x4x192xf32, #tpu.memory_space<vmem>>, %arg2: memref<2x192xf32, #tpu.memory_space<vmem>>, %arg3: memref<192x64xbf16, #tpu.memory_space<vmem>>, %arg4: memref<6x64xf32, #tpu.memory_space<vmem>>, %arg5: memref<4x64xf32, #tpu.memory_space<vmem>>, %arg6: memref<2x6x64xf32, #tpu.memory_space<vmem>>, %arg7: memref<2x64x256xbf16, #tpu.memory_space<vmem>>, %arg8: memref<2x64x128xbf16, #tpu.memory_space<vmem>>, %arg9: memref<2x64x128xbf16, #tpu.memory_space<vmem>>, %arg10: memref<2x1x128xf32, #tpu.memory_space<vmem>>, %arg11: memref<2x128x64xbf16, #tpu.memory_space<vmem>>, %arg12: memref<64x128xbf16, #tpu.memory_space<vmem>>, %arg13: memref<3x128x128xbf16, #tpu.memory_space<vmem>>, %arg14: memref<4x128xf32, #tpu.memory_space<vmem>>, %arg15: memref<1x1x128xf32, #tpu.memory_space<vmem>>, %arg16: memref<5x64xf32, #tpu.memory_space<vmem>>) attributes {dimension_semantics = [#tpu.dimension_semantics<parallel>], iteration_bounds = array<i64: 2>, scalar_prefetch = 0 : i64, scratch_operands = 1 : i64, tpu.core_type = #tpu.core_type<tc>, window_params = [{transform_indices = @transform_0, window_bounds = array<i64: 1, 4, 192>}, {pipeline_mode = #tpu.pipeline_mode<synchronous>, transform_indices = @transform_1, window_bounds = array<i64: 2, 192>}, {pipeline_mode = #tpu.pipeline_mode<synchronous>, transform_indices = @transform_2, window_bounds = array<i64: 192, 64>}, {pipeline_mode = #tpu.pipeline_mode<synchronous>, transform_indices = @transform_3, window_bounds = array<i64: 6, 64>}, {pipeline_mode = #tpu.pipeline_mode<synchronous>, transform_indices = @transform_4, window_bounds = array<i64: 4, 64>}, {pipeline_mode = #tpu.pipeline_mode<synchronous>, transform_indices = @transform_5, window_bounds = array<i64: 2, 6, 64>}, {pipeline_mode = #tpu.pipeline_mode<synchronous>, transform_indices = @transform_6, window_bounds = array<i64: 2, 64, 256>}, {pipeline_mode = #tpu.pipeline_mode<synchronous>, transform_indices = @transform_7, window_bounds = array<i64: 2, 64, 128>}, {pipeline_mode = #tpu.pipeline_mode<synchronous>, transform_indices = @transform_8, window_bounds = array<i64: 2, 64, 128>}, {pipeline_mode = #tpu.pipeline_mode<synchronous>, transform_indices = @transform_9, window_bounds = array<i64: 2, 1, 128>}, {pipeline_mode = #tpu.pipeline_mode<synchronous>, transform_indices = @transform_10, window_bounds = array<i64: 2, 128, 64>}, {pipeline_mode = #tpu.pipeline_mode<synchronous>, transform_indices = @transform_11, window_bounds = array<i64: 64, 128>}, {pipeline_mode = #tpu.pipeline_mode<synchronous>, transform_indices = @transform_12, window_bounds = array<i64: 3, 128, 128>}, {pipeline_mode = #tpu.pipeline_mode<synchronous>, transform_indices = @transform_13, window_bounds = array<i64: 4, 128>}, {transform_indices = @transform_14, window_bounds = array<i64: 1, 1, 128>}]} {
    %c0 = arith.constant 0 : index
    %c0_0 = arith.constant 0 : index
    %0 = vector.load %arg4[%c0, %c0_0] : memref<6x64xf32, #tpu.memory_space<vmem>>, vector<6x64xf32>
    %1 = vector.extract_strided_slice %0 {offsets = [0, 0], sizes = [1, 64], strides = [1, 1]} : vector<6x64xf32> to vector<1x64xf32>
    %2 = vector.extract_strided_slice %0 {offsets = [1, 0], sizes = [1, 64], strides = [1, 1]} : vector<6x64xf32> to vector<1x64xf32>
    %3 = vector.extract_strided_slice %0 {offsets = [2, 0], sizes = [1, 64], strides = [1, 1]} : vector<6x64xf32> to vector<1x64xf32>
    %4 = vector.extract_strided_slice %0 {offsets = [3, 0], sizes = [1, 64], strides = [1, 1]} : vector<6x64xf32> to vector<1x64xf32>
    %5 = vector.extract_strided_slice %0 {offsets = [4, 0], sizes = [1, 64], strides = [1, 1]} : vector<6x64xf32> to vector<1x64xf32>
    %6 = vector.extract_strided_slice %0 {offsets = [5, 0], sizes = [1, 64], strides = [1, 1]} : vector<6x64xf32> to vector<1x64xf32>
    %c0_1 = arith.constant 0 : index
    %c0_2 = arith.constant 0 : index
    %7 = vector.load %arg2[%c0_1, %c0_2] : memref<2x192xf32, #tpu.memory_space<vmem>>, vector<2x192xf32>
    %c0_3 = arith.constant 0 : index
    %c0_4 = arith.constant 0 : index
    %c0_5 = arith.constant 0 : index
    %8 = vector.load %arg1[%c0_3, %c0_4, %c0_5] : memref<1x4x192xf32, #tpu.memory_space<vmem>>, vector<1x4x192xf32>
    %9 = vector.shape_cast %8 : vector<1x4x192xf32> to vector<4x192xf32>
    %10 = vector.extract_strided_slice %7 {offsets = [0, 0], sizes = [1, 192], strides = [1, 1]} : vector<2x192xf32> to vector<1x192xf32>
    %11 = vector.extract_strided_slice %7 {offsets = [1, 0], sizes = [1, 192], strides = [1, 1]} : vector<2x192xf32> to vector<1x192xf32>
    %cst = arith.constant dense<0.000000e+00> : vector<4xf32>
    %12 = vector.multi_reduction <add>, %9, %cst [1] : vector<4x192xf32> to vector<4xf32>
    %13 = vector.shape_cast %12 : vector<4xf32> to vector<4x1xf32>
    %cst_6 = arith.constant 1.920000e+02 : f32
    %14 = vector.broadcast %cst_6 : f32 to vector<4x1xf32>
    %15 = arith.divf %13, %14 : vector<4x1xf32>
    %16 = vector.broadcast %15 : vector<4x1xf32> to vector<4x192xf32>
    %17 = arith.subf %9, %16 : vector<4x192xf32>
    %18 = arith.mulf %17, %17 : vector<4x192xf32>
    %cst_7 = arith.constant dense<0.000000e+00> : vector<4xf32>
    %19 = vector.multi_reduction <add>, %18, %cst_7 [1] : vector<4x192xf32> to vector<4xf32>
    %20 = vector.shape_cast %19 : vector<4xf32> to vector<4x1xf32>
    %cst_8 = arith.constant 1.920000e+02 : f32
    %21 = vector.broadcast %cst_8 : f32 to vector<4x1xf32>
    %22 = arith.divf %20, %21 : vector<4x1xf32>
    %cst_9 = arith.constant 9.99999974E-6 : f32
    %23 = vector.broadcast %cst_9 : f32 to vector<4x1xf32>
    %24 = arith.addf %22, %23 : vector<4x1xf32>
    %25 = math.rsqrt %24 : vector<4x1xf32>
    %26 = vector.broadcast %25 : vector<4x1xf32> to vector<4x192xf32>
    %27 = arith.mulf %17, %26 : vector<4x192xf32>
    %28 = vector.broadcast %10 : vector<1x192xf32> to vector<4x192xf32>
    %29 = arith.mulf %27, %28 : vector<4x192xf32>
    %30 = vector.broadcast %11 : vector<1x192xf32> to vector<4x192xf32>
    %31 = arith.addf %29, %30 : vector<4x192xf32>
    %32 = arith.truncf %31 : vector<4x192xf32> to vector<4x192xbf16>
    %c0_10 = arith.constant 0 : index
    %c0_11 = arith.constant 0 : index
    %33 = vector.load %arg3[%c0_10, %c0_11] : memref<192x64xbf16, #tpu.memory_space<vmem>>, vector<192x64xbf16>
    %cst_12 = arith.constant dense<0.000000e+00> : vector<4x64xf32>
    %34 = tpu.matmul %32, %33, %cst_12 {dimension_numbers = #tpu.dot_dimension_numbers<[1], [0], [0], [1], [0, 0, 1, 1], [], []>} : vector<4x192xbf16>, vector<192x64xbf16>, vector<4x64xf32> -> vector<4x64xf32>
    %35 = vector.broadcast %1 : vector<1x64xf32> to vector<4x64xf32>
    %36 = arith.addf %34, %35 : vector<4x64xf32>
    %cst_13 = arith.constant dense<0.000000e+00> : vector<4xf32>
    %37 = vector.multi_reduction <add>, %36, %cst_13 [1] : vector<4x64xf32> to vector<4xf32>
    %38 = vector.shape_cast %37 : vector<4xf32> to vector<4x1xf32>
    %cst_14 = arith.constant 6.400000e+01 : f32
    %39 = vector.broadcast %cst_14 : f32 to vector<4x1xf32>
    %40 = arith.divf %38, %39 : vector<4x1xf32>
    %41 = vector.broadcast %40 : vector<4x1xf32> to vector<4x64xf32>
    %42 = arith.subf %36, %41 : vector<4x64xf32>
    %43 = arith.mulf %42, %42 : vector<4x64xf32>
    %cst_15 = arith.constant dense<0.000000e+00> : vector<4xf32>
    %44 = vector.multi_reduction <add>, %43, %cst_15 [1] : vector<4x64xf32> to vector<4xf32>
    %45 = vector.shape_cast %44 : vector<4xf32> to vector<4x1xf32>
    %cst_16 = arith.constant 6.400000e+01 : f32
    %46 = vector.broadcast %cst_16 : f32 to vector<4x1xf32>
    %47 = arith.divf %45, %46 : vector<4x1xf32>
    %cst_17 = arith.constant 9.99999974E-6 : f32
    %48 = vector.broadcast %cst_17 : f32 to vector<4x1xf32>
    %49 = arith.addf %47, %48 : vector<4x1xf32>
    %50 = math.rsqrt %49 : vector<4x1xf32>
    %51 = vector.broadcast %50 : vector<4x1xf32> to vector<4x64xf32>
    %52 = arith.mulf %42, %51 : vector<4x64xf32>
    %53 = vector.broadcast %2 : vector<1x64xf32> to vector<4x64xf32>
    %54 = arith.mulf %52, %53 : vector<4x64xf32>
    %55 = vector.broadcast %3 : vector<1x64xf32> to vector<4x64xf32>
    %56 = arith.addf %54, %55 : vector<4x64xf32>
    %c0_18 = arith.constant 0 : index
    %c0_19 = arith.constant 0 : index
    %57 = vector.load %arg16[%c0_18, %c0_19] : memref<5x64xf32, #tpu.memory_space<vmem>>, vector<1x64xf32>
    tpu.vector_store %arg16[%c0_18, %c0_19], %4 {strides = array<i32>} : memref<5x64xf32, #tpu.memory_space<vmem>>, vector<1x64xf32>,
    %c0_20 = arith.constant 0 : index
    %c0_21 = arith.constant 0 : index
    %58 = vector.load %arg5[%c0_20, %c0_21] : memref<4x64xf32, #tpu.memory_space<vmem>>, vector<4x64xf32>
    %59 = arith.addf %56, %58 : vector<4x64xf32>
    %c1 = arith.constant 1 : index
    %c0_22 = arith.constant 0 : index
    %60 = vector.load %arg16[%c1, %c0_22] : memref<5x64xf32, #tpu.memory_space<vmem>>, vector<4x64xf32>
    tpu.vector_store %arg16[%c1, %c0_22], %59 {strides = array<i32>} : memref<5x64xf32, #tpu.memory_space<vmem>>, vector<4x64xf32>,
    %c0_23 = arith.constant 0 : index
    %c0_24 = arith.constant 0 : index
    %61 = vector.load %arg16[%c0_23, %c0_24] : memref<5x64xf32, #tpu.memory_space<vmem>>, vector<5x64xf32>
    %c0_i32 = arith.constant 0 : i32
    %62 = arith.index_cast %c0_i32 : i32 to index
    %c0_25 = arith.constant 0 : index
    %c0_26 = arith.constant 0 : index
    %63 = vector.load %arg6[%62, %c0_25, %c0_26] : memref<2x6x64xf32, #tpu.memory_space<vmem>>, vector<1x6x64xf32>
    %64 = vector.shape_cast %63 : vector<1x6x64xf32> to vector<6x64xf32>
    %65 = vector.extract_strided_slice %64 {offsets = [0, 0], sizes = [1, 64], strides = [1, 1]} : vector<6x64xf32> to vector<1x64xf32>
    %66 = vector.extract_strided_slice %64 {offsets = [1, 0], sizes = [1, 64], strides = [1, 1]} : vector<6x64xf32> to vector<1x64xf32>
    %67 = vector.extract_strided_slice %64 {offsets = [2, 0], sizes = [1, 64], strides = [1, 1]} : vector<6x64xf32> to vector<1x64xf32>
    %68 = vector.extract_strided_slice %64 {offsets = [3, 0], sizes = [1, 64], strides = [1, 1]} : vector<6x64xf32> to vector<1x64xf32>
    %69 = vector.extract_strided_slice %64 {offsets = [4, 0], sizes = [1, 64], strides = [1, 1]} : vector<6x64xf32> to vector<1x64xf32>
    %70 = vector.extract_strided_slice %64 {offsets = [5, 0], sizes = [1, 64], strides = [1, 1]} : vector<6x64xf32> to vector<1x64xf32>
    %cst_27 = arith.constant dense<0.000000e+00> : vector<5xf32>
    %71 = vector.multi_reduction <add>, %61, %cst_27 [1] : vector<5x64xf32> to vector<5xf32>
    %72 = vector.shape_cast %71 : vector<5xf32> to vector<5x1xf32>
    %cst_28 = arith.constant 6.400000e+01 : f32
    %73 = vector.broadcast %cst_28 : f32 to vector<5x1xf32>
    %74 = arith.divf %72, %73 : vector<5x1xf32>
    %75 = vector.broadcast %74 : vector<5x1xf32> to vector<5x64xf32>
    %76 = arith.subf %61, %75 : vector<5x64xf32>
    %77 = arith.mulf %76, %76 : vector<5x64xf32>
    %cst_29 = arith.constant dense<0.000000e+00> : vector<5xf32>
    %78 = vector.multi_reduction <add>, %77, %cst_29 [1] : vector<5x64xf32> to vector<5xf32>
    %79 = vector.shape_cast %78 : vector<5xf32> to vector<5x1xf32>
    %cst_30 = arith.constant 6.400000e+01 : f32
    %80 = vector.broadcast %cst_30 : f32 to vector<5x1xf32>
    %81 = arith.divf %79, %80 : vector<5x1xf32>
    %cst_31 = arith.constant 9.99999974E-6 : f32
    %82 = vector.broadcast %cst_31 : f32 to vector<5x1xf32>
    %83 = arith.addf %81, %82 : vector<5x1xf32>
    %84 = math.rsqrt %83 : vector<5x1xf32>
    %85 = vector.broadcast %84 : vector<5x1xf32> to vector<5x64xf32>
    %86 = arith.mulf %76, %85 : vector<5x64xf32>
    %87 = vector.broadcast %65 : vector<1x64xf32> to vector<5x64xf32>
    %88 = arith.mulf %86, %87 : vector<5x64xf32>
    %89 = vector.broadcast %66 : vector<1x64xf32> to vector<5x64xf32>
    %90 = arith.addf %88, %89 : vector<5x64xf32>
    %91 = arith.truncf %90 : vector<5x64xf32> to vector<5x64xbf16>
    %92 = arith.index_cast %c0_i32 : i32 to index
    %c0_32 = arith.constant 0 : index
    %c0_33 = arith.constant 0 : index
    %93 = vector.load %arg7[%92, %c0_32, %c0_33] : memref<2x64x256xbf16, #tpu.memory_space<vmem>>, vector<1x64x256xbf16>
    %94 = vector.shape_cast %93 : vector<1x64x256xbf16> to vector<64x256xbf16>
    %cst_34 = arith.constant dense<0.000000e+00> : vector<5x256xf32>
    %95 = tpu.matmul %91, %94, %cst_34 {dimension_numbers = #tpu.dot_dimension_numbers<[1], [0], [0], [1], [0, 0, 1, 1], [], []>} : vector<5x64xbf16>, vector<64x256xbf16>, vector<5x256xf32> -> vector<5x256xf32>
    %96 = arith.index_cast %c0_i32 : i32 to index
    %c0_35 = arith.constant 0 : index
    %c0_36 = arith.constant 0 : index
    %97 = vector.load %arg8[%96, %c0_35, %c0_36] : memref<2x64x128xbf16, #tpu.memory_space<vmem>>, vector<1x64x128xbf16>
    %98 = vector.shape_cast %97 : vector<1x64x128xbf16> to vector<64x128xbf16>
    %cst_37 = arith.constant dense<0.000000e+00> : vector<5x128xf32>
    %99 = tpu.matmul %91, %98, %cst_37 {dimension_numbers = #tpu.dot_dimension_numbers<[1], [0], [0], [1], [0, 0, 1, 1], [], []>} : vector<5x64xbf16>, vector<64x128xbf16>, vector<5x128xf32> -> vector<5x128xf32>
    %cst_38 = arith.constant 0.000000e+00 : f32
    %100 = vector.broadcast %cst_38 : f32 to vector<5x64xf32>
    %101 = vector.extract_strided_slice %95 {offsets = [0, 0], sizes = [5, 64], strides = [1, 1]} : vector<5x256xf32> to vector<5x64xf32>
    %102 = vector.extract_strided_slice %95 {offsets = [0, 128], sizes = [5, 64], strides = [1, 1]} : vector<5x256xf32> to vector<5x64xf32>
    %103 = arith.truncf %101 : vector<5x64xf32> to vector<5x64xbf16>
    %104 = arith.truncf %102 : vector<5x64xf32> to vector<5x64xbf16>
    %cst_39 = arith.constant dense<0.000000e+00> : vector<5x5xf32>
    %105 = tpu.matmul %103, %104, %cst_39 {dimension_numbers = #tpu.dot_dimension_numbers<[1], [1], [0], [0], [0, 0, 1, 0], [], []>} : vector<5x64xbf16>, vector<5x64xbf16>, vector<5x5xf32> -> vector<5x5xf32>
    %cst_40 = arith.constant 1.250000e-01 : f32
    %106 = vector.broadcast %cst_40 : f32 to vector<5x5xf32>
    %107 = arith.mulf %105, %106 : vector<5x5xf32>
    %cst_41 = arith.constant dense<0xFF800000> : vector<5xf32>
    %108 = vector.multi_reduction <maximumf>, %107, %cst_41 [1] : vector<5x5xf32> to vector<5xf32>
    %109 = vector.shape_cast %108 : vector<5xf32> to vector<5x1xf32>
    %110 = vector.broadcast %109 : vector<5x1xf32> to vector<5x5xf32>
    %111 = arith.subf %107, %110 : vector<5x5xf32>
    %112 = math.exp %111 : vector<5x5xf32>
    %cst_42 = arith.constant dense<0.000000e+00> : vector<5xf32>
    %113 = vector.multi_reduction <add>, %112, %cst_42 [1] : vector<5x5xf32> to vector<5xf32>
    %114 = vector.shape_cast %113 : vector<5xf32> to vector<5x1xf32>
    %115 = tpu.reciprocal %114 {approx = true} : vector<5x1xf32> -> vector<5x1xf32>
    %116 = vector.broadcast %115 : vector<5x1xf32> to vector<5x5xf32>
    %117 = arith.mulf %112, %116 : vector<5x5xf32>
    %118 = arith.truncf %117 : vector<5x5xf32> to vector<5x5xbf16>
    %119 = vector.extract_strided_slice %99 {offsets = [0, 0], sizes = [5, 64], strides = [1, 1]} : vector<5x128xf32> to vector<5x64xf32>
    %120 = arith.truncf %119 : vector<5x64xf32> to vector<5x64xbf16>
    %cst_43 = arith.constant dense<0.000000e+00> : vector<5x64xf32>
    %121 = tpu.matmul %118, %120, %cst_43 {dimension_numbers = #tpu.dot_dimension_numbers<[1], [0], [0], [1], [0, 0, 1, 1], [], []>} : vector<5x5xbf16>, vector<5x64xbf16>, vector<5x64xf32> -> vector<5x64xf32>
    %122 = arith.addf %100, %121 : vector<5x64xf32>
    %123 = vector.extract_strided_slice %95 {offsets = [0, 64], sizes = [5, 64], strides = [1, 1]} : vector<5x256xf32> to vector<5x64xf32>
    %124 = vector.extract_strided_slice %95 {offsets = [0, 192], sizes = [5, 64], strides = [1, 1]} : vector<5x256xf32> to vector<5x64xf32>
    %125 = arith.truncf %123 : vector<5x64xf32> to vector<5x64xbf16>
    %126 = arith.truncf %124 : vector<5x64xf32> to vector<5x64xbf16>
    %cst_44 = arith.constant dense<0.000000e+00> : vector<5x5xf32>
    %127 = tpu.matmul %125, %126, %cst_44 {dimension_numbers = #tpu.dot_dimension_numbers<[1], [1], [0], [0], [0, 0, 1, 0], [], []>} : vector<5x64xbf16>, vector<5x64xbf16>, vector<5x5xf32> -> vector<5x5xf32>
    %cst_45 = arith.constant 1.250000e-01 : f32
    %128 = vector.broadcast %cst_45 : f32 to vector<5x5xf32>
    %129 = arith.mulf %127, %128 : vector<5x5xf32>
    %cst_46 = arith.constant dense<0xFF800000> : vector<5xf32>
    %130 = vector.multi_reduction <maximumf>, %129, %cst_46 [1] : vector<5x5xf32> to vector<5xf32>
    %131 = vector.shape_cast %130 : vector<5xf32> to vector<5x1xf32>
    %132 = vector.broadcast %131 : vector<5x1xf32> to vector<5x5xf32>
    %133 = arith.subf %129, %132 : vector<5x5xf32>
    %134 = math.exp %133 : vector<5x5xf32>
    %cst_47 = arith.constant dense<0.000000e+00> : vector<5xf32>
    %135 = vector.multi_reduction <add>, %134, %cst_47 [1] : vector<5x5xf32> to vector<5xf32>
    %136 = vector.shape_cast %135 : vector<5xf32> to vector<5x1xf32>
    %137 = tpu.reciprocal %136 {approx = true} : vector<5x1xf32> -> vector<5x1xf32>
    %138 = vector.broadcast %137 : vector<5x1xf32> to vector<5x5xf32>
    %139 = arith.mulf %134, %138 : vector<5x5xf32>
    %140 = arith.truncf %139 : vector<5x5xf32> to vector<5x5xbf16>
    %141 = vector.extract_strided_slice %99 {offsets = [0, 64], sizes = [5, 64], strides = [1, 1]} : vector<5x128xf32> to vector<5x64xf32>
    %142 = arith.truncf %141 : vector<5x64xf32> to vector<5x64xbf16>
    %cst_48 = arith.constant dense<0.000000e+00> : vector<5x64xf32>
    %143 = tpu.matmul %140, %142, %cst_48 {dimension_numbers = #tpu.dot_dimension_numbers<[1], [0], [0], [1], [0, 0, 1, 1], [], []>} : vector<5x5xbf16>, vector<5x64xbf16>, vector<5x64xf32> -> vector<5x64xf32>
    %144 = arith.addf %122, %143 : vector<5x64xf32>
    %145 = arith.addf %61, %144 : vector<5x64xf32>
    %146 = vector.broadcast %67 : vector<1x64xf32> to vector<5x64xf32>
    %147 = arith.addf %145, %146 : vector<5x64xf32>
    %cst_49 = arith.constant dense<0.000000e+00> : vector<5xf32>
    %148 = vector.multi_reduction <add>, %147, %cst_49 [1] : vector<5x64xf32> to vector<5xf32>
    %149 = vector.shape_cast %148 : vector<5xf32> to vector<5x1xf32>
    %cst_50 = arith.constant 6.400000e+01 : f32
    %150 = vector.broadcast %cst_50 : f32 to vector<5x1xf32>
    %151 = arith.divf %149, %150 : vector<5x1xf32>
    %152 = vector.broadcast %151 : vector<5x1xf32> to vector<5x64xf32>
    %153 = arith.subf %147, %152 : vector<5x64xf32>
    %154 = arith.mulf %153, %153 : vector<5x64xf32>
    %cst_51 = arith.constant dense<0.000000e+00> : vector<5xf32>
    %155 = vector.multi_reduction <add>, %154, %cst_51 [1] : vector<5x64xf32> to vector<5xf32>
    %156 = vector.shape_cast %155 : vector<5xf32> to vector<5x1xf32>
    %cst_52 = arith.constant 6.400000e+01 : f32
    %157 = vector.broadcast %cst_52 : f32 to vector<5x1xf32>
    %158 = arith.divf %156, %157 : vector<5x1xf32>
    %cst_53 = arith.constant 9.99999974E-6 : f32
    %159 = vector.broadcast %cst_53 : f32 to vector<5x1xf32>
    %160 = arith.addf %158, %159 : vector<5x1xf32>
    %161 = math.rsqrt %160 : vector<5x1xf32>
    %162 = vector.broadcast %161 : vector<5x1xf32> to vector<5x64xf32>
    %163 = arith.mulf %153, %162 : vector<5x64xf32>
    %164 = vector.broadcast %68 : vector<1x64xf32> to vector<5x64xf32>
    %165 = arith.mulf %163, %164 : vector<5x64xf32>
    %166 = vector.broadcast %69 : vector<1x64xf32> to vector<5x64xf32>
    %167 = arith.addf %165, %166 : vector<5x64xf32>
    %168 = arith.truncf %167 : vector<5x64xf32> to vector<5x64xbf16>
    %169 = arith.index_cast %c0_i32 : i32 to index
    %c0_54 = arith.constant 0 : index
    %c0_55 = arith.constant 0 : index
    %170 = vector.load %arg9[%169, %c0_54, %c0_55] : memref<2x64x128xbf16, #tpu.memory_space<vmem>>, vector<1x64x128xbf16>
    %171 = vector.shape_cast %170 : vector<1x64x128xbf16> to vector<64x128xbf16>
    %cst_56 = arith.constant dense<0.000000e+00> : vector<5x128xf32>
    %172 = tpu.matmul %168, %171, %cst_56 {dimension_numbers = #tpu.dot_dimension_numbers<[1], [0], [0], [1], [0, 0, 1, 1], [], []>} : vector<5x64xbf16>, vector<64x128xbf16>, vector<5x128xf32> -> vector<5x128xf32>
    %173 = arith.index_cast %c0_i32 : i32 to index
    %c0_57 = arith.constant 0 : index
    %c0_58 = arith.constant 0 : index
    %174 = vector.load %arg10[%173, %c0_57, %c0_58] : memref<2x1x128xf32, #tpu.memory_space<vmem>>, vector<1x1x128xf32>
    %175 = vector.shape_cast %174 : vector<1x1x128xf32> to vector<1x128xf32>
    %176 = vector.broadcast %175 : vector<1x128xf32> to vector<5x128xf32>
    %177 = arith.addf %172, %176 : vector<5x128xf32>
    %cst_59 = arith.constant 5.000000e-01 : f32
    %178 = vector.broadcast %cst_59 : f32 to vector<5x128xf32>
    %179 = arith.mulf %178, %177 : vector<5x128xf32>
    %cst_60 = arith.constant 0.707106769 : f32
    %180 = vector.broadcast %cst_60 : f32 to vector<5x128xf32>
    %181 = arith.mulf %177, %180 : vector<5x128xf32>
    %cst_61 = arith.constant -4.000000e+00 : f32
    %cst_62 = arith.constant 4.000000e+00 : f32
    %182 = vector.broadcast %cst_61 : f32 to vector<5x128xf32>
    %183 = arith.maximumf %182, %181 : vector<5x128xf32>
    %184 = vector.broadcast %cst_62 : f32 to vector<5x128xf32>
    %185 = arith.minimumf %184, %183 : vector<5x128xf32>
    %186 = arith.mulf %185, %185 : vector<5x128xf32>
    %cst_63 = arith.constant 0.000000e+00 : f32
    %187 = vector.broadcast %cst_63 : f32 to vector<5x128xf32>
    %188 = arith.mulf %187, %186 : vector<5x128xf32>
    %cst_64 = arith.constant 2.29050653E-4 : f32
    %189 = vector.broadcast %cst_64 : f32 to vector<5x128xf32>
    %190 = arith.addf %188, %189 : vector<5x128xf32>
    %191 = arith.mulf %190, %186 : vector<5x128xf32>
    %cst_65 = arith.constant 0.00340829091 : f32
    %192 = vector.broadcast %cst_65 : f32 to vector<5x128xf32>
    %193 = arith.addf %191, %192 : vector<5x128xf32>
    %194 = arith.mulf %193, %186 : vector<5x128xf32>
    %cst_66 = arith.constant 0.0509556942 : f32
    %195 = vector.broadcast %cst_66 : f32 to vector<5x128xf32>
    %196 = arith.addf %194, %195 : vector<5x128xf32>
    %197 = arith.mulf %196, %186 : vector<5x128xf32>
    %cst_67 = arith.constant 0.185208321 : f32
    %198 = vector.broadcast %cst_67 : f32 to vector<5x128xf32>
    %199 = arith.addf %197, %198 : vector<5x128xf32>
    %200 = arith.mulf %199, %186 : vector<5x128xf32>
    %cst_68 = arith.constant 1.12837911 : f32
    %201 = vector.broadcast %cst_68 : f32 to vector<5x128xf32>
    %202 = arith.addf %200, %201 : vector<5x128xf32>
    %203 = arith.mulf %185, %202 : vector<5x128xf32>
    %cst_69 = arith.constant 0.000000e+00 : f32
    %204 = vector.broadcast %cst_69 : f32 to vector<5x128xf32>
    %205 = arith.mulf %204, %186 : vector<5x128xf32>
    %cst_70 = arith.constant -1.17916031E-7 : f32
    %206 = vector.broadcast %cst_70 : f32 to vector<5x128xf32>
    %207 = arith.addf %205, %206 : vector<5x128xf32>
    %208 = arith.mulf %207, %186 : vector<5x128xf32>
    %cst_71 = arith.constant 2.35479656E-5 : f32
    %209 = vector.broadcast %cst_71 : f32 to vector<5x128xf32>
    %210 = arith.addf %208, %209 : vector<5x128xf32>
    %211 = arith.mulf %210, %186 : vector<5x128xf32>
    %cst_72 = arith.constant 0.00101796258 : f32
    %212 = vector.broadcast %cst_72 : f32 to vector<5x128xf32>
    %213 = arith.addf %211, %212 : vector<5x128xf32>
    %214 = arith.mulf %213, %186 : vector<5x128xf32>
    %cst_73 = arith.constant 0.0140704699 : f32
    %215 = vector.broadcast %cst_73 : f32 to vector<5x128xf32>
    %216 = arith.addf %214, %215 : vector<5x128xf32>
    %217 = arith.mulf %216, %186 : vector<5x128xf32>
    %cst_74 = arith.constant 0.110985048 : f32
    %218 = vector.broadcast %cst_74 : f32 to vector<5x128xf32>
    %219 = arith.addf %217, %218 : vector<5x128xf32>
    %220 = arith.mulf %219, %186 : vector<5x128xf32>
    %cst_75 = arith.constant 0.497469246 : f32
    %221 = vector.broadcast %cst_75 : f32 to vector<5x128xf32>
    %222 = arith.addf %220, %221 : vector<5x128xf32>
    %223 = arith.mulf %222, %186 : vector<5x128xf32>
    %cst_76 = arith.constant 1.000000e+00 : f32
    %224 = vector.broadcast %cst_76 : f32 to vector<5x128xf32>
    %225 = arith.addf %223, %224 : vector<5x128xf32>
    %226 = tpu.reciprocal %225 {approx = true} : vector<5x128xf32> -> vector<5x128xf32>
    %227 = arith.mulf %203, %226 : vector<5x128xf32>
    %cst_77 = arith.constant 1.000000e+00 : f32
    %228 = vector.broadcast %cst_77 : f32 to vector<5x128xf32>
    %229 = arith.addf %228, %227 : vector<5x128xf32>
    %230 = arith.mulf %179, %229 : vector<5x128xf32>
    %231 = arith.truncf %230 : vector<5x128xf32> to vector<5x128xbf16>
    %232 = arith.index_cast %c0_i32 : i32 to index
    %c0_78 = arith.constant 0 : index
    %c0_79 = arith.constant 0 : index
    %233 = vector.load %arg11[%232, %c0_78, %c0_79] : memref<2x128x64xbf16, #tpu.memory_space<vmem>>, vector<1x128x64xbf16>
    %234 = vector.shape_cast %233 : vector<1x128x64xbf16> to vector<128x64xbf16>
    %cst_80 = arith.constant dense<0.000000e+00> : vector<5x64xf32>
    %235 = tpu.matmul %231, %234, %cst_80 {dimension_numbers = #tpu.dot_dimension_numbers<[1], [0], [0], [1], [0, 0, 1, 1], [], []>} : vector<5x128xbf16>, vector<128x64xbf16>, vector<5x64xf32> -> vector<5x64xf32>
    %236 = arith.addf %147, %235 : vector<5x64xf32>
    %237 = vector.broadcast %70 : vector<1x64xf32> to vector<5x64xf32>
    %238 = arith.addf %236, %237 : vector<5x64xf32>
    %c1_i32 = arith.constant 1 : i32
    %239 = arith.index_cast %c1_i32 : i32 to index
    %c0_81 = arith.constant 0 : index
    %c0_82 = arith.constant 0 : index
    %240 = vector.load %arg6[%239, %c0_81, %c0_82] : memref<2x6x64xf32, #tpu.memory_space<vmem>>, vector<1x6x64xf32>
    %241 = vector.shape_cast %240 : vector<1x6x64xf32> to vector<6x64xf32>
    %242 = vector.extract_strided_slice %241 {offsets = [0, 0], sizes = [1, 64], strides = [1, 1]} : vector<6x64xf32> to vector<1x64xf32>
    %243 = vector.extract_strided_slice %241 {offsets = [1, 0], sizes = [1, 64], strides = [1, 1]} : vector<6x64xf32> to vector<1x64xf32>
    %244 = vector.extract_strided_slice %241 {offsets = [2, 0], sizes = [1, 64], strides = [1, 1]} : vector<6x64xf32> to vector<1x64xf32>
    %245 = vector.extract_strided_slice %241 {offsets = [3, 0], sizes = [1, 64], strides = [1, 1]} : vector<6x64xf32> to vector<1x64xf32>
    %246 = vector.extract_strided_slice %241 {offsets = [4, 0], sizes = [1, 64], strides = [1, 1]} : vector<6x64xf32> to vector<1x64xf32>
    %247 = vector.extract_strided_slice %241 {offsets = [5, 0], sizes = [1, 64], strides = [1, 1]} : vector<6x64xf32> to vector<1x64xf32>
    %cst_83 = arith.constant dense<0.000000e+00> : vector<5xf32>
    %248 = vector.multi_reduction <add>, %238, %cst_83 [1] : vector<5x64xf32> to vector<5xf32>
    %249 = vector.shape_cast %248 : vector<5xf32> to vector<5x1xf32>
    %cst_84 = arith.constant 6.400000e+01 : f32
    %250 = vector.broadcast %cst_84 : f32 to vector<5x1xf32>
    %251 = arith.divf %249, %250 : vector<5x1xf32>
    %252 = vector.broadcast %251 : vector<5x1xf32> to vector<5x64xf32>
    %253 = arith.subf %238, %252 : vector<5x64xf32>
    %254 = arith.mulf %253, %253 : vector<5x64xf32>
    %cst_85 = arith.constant dense<0.000000e+00> : vector<5xf32>
    %255 = vector.multi_reduction <add>, %254, %cst_85 [1] : vector<5x64xf32> to vector<5xf32>
    %256 = vector.shape_cast %255 : vector<5xf32> to vector<5x1xf32>
    %cst_86 = arith.constant 6.400000e+01 : f32
    %257 = vector.broadcast %cst_86 : f32 to vector<5x1xf32>
    %258 = arith.divf %256, %257 : vector<5x1xf32>
    %cst_87 = arith.constant 9.99999974E-6 : f32
    %259 = vector.broadcast %cst_87 : f32 to vector<5x1xf32>
    %260 = arith.addf %258, %259 : vector<5x1xf32>
    %261 = math.rsqrt %260 : vector<5x1xf32>
    %262 = vector.broadcast %261 : vector<5x1xf32> to vector<5x64xf32>
    %263 = arith.mulf %253, %262 : vector<5x64xf32>
    %264 = vector.broadcast %242 : vector<1x64xf32> to vector<5x64xf32>
    %265 = arith.mulf %263, %264 : vector<5x64xf32>
    %266 = vector.broadcast %243 : vector<1x64xf32> to vector<5x64xf32>
    %267 = arith.addf %265, %266 : vector<5x64xf32>
    %268 = arith.truncf %267 : vector<5x64xf32> to vector<5x64xbf16>
    %269 = arith.index_cast %c1_i32 : i32 to index
    %c0_88 = arith.constant 0 : index
    %c0_89 = arith.constant 0 : index
    %270 = vector.load %arg7[%269, %c0_88, %c0_89] : memref<2x64x256xbf16, #tpu.memory_space<vmem>>, vector<1x64x256xbf16>
    %271 = vector.shape_cast %270 : vector<1x64x256xbf16> to vector<64x256xbf16>
    %cst_90 = arith.constant dense<0.000000e+00> : vector<5x256xf32>
    %272 = tpu.matmul %268, %271, %cst_90 {dimension_numbers = #tpu.dot_dimension_numbers<[1], [0], [0], [1], [0, 0, 1, 1], [], []>} : vector<5x64xbf16>, vector<64x256xbf16>, vector<5x256xf32> -> vector<5x256xf32>
    %273 = arith.index_cast %c1_i32 : i32 to index
    %c0_91 = arith.constant 0 : index
    %c0_92 = arith.constant 0 : index
    %274 = vector.load %arg8[%273, %c0_91, %c0_92] : memref<2x64x128xbf16, #tpu.memory_space<vmem>>, vector<1x64x128xbf16>
    %275 = vector.shape_cast %274 : vector<1x64x128xbf16> to vector<64x128xbf16>
    %cst_93 = arith.constant dense<0.000000e+00> : vector<5x128xf32>
    %276 = tpu.matmul %268, %275, %cst_93 {dimension_numbers = #tpu.dot_dimension_numbers<[1], [0], [0], [1], [0, 0, 1, 1], [], []>} : vector<5x64xbf16>, vector<64x128xbf16>, vector<5x128xf32> -> vector<5x128xf32>
    %cst_94 = arith.constant 0.000000e+00 : f32
    %277 = vector.broadcast %cst_94 : f32 to vector<5x64xf32>
    %278 = vector.extract_strided_slice %272 {offsets = [0, 0], sizes = [5, 64], strides = [1, 1]} : vector<5x256xf32> to vector<5x64xf32>
    %279 = vector.extract_strided_slice %272 {offsets = [0, 128], sizes = [5, 64], strides = [1, 1]} : vector<5x256xf32> to vector<5x64xf32>
    %280 = arith.truncf %278 : vector<5x64xf32> to vector<5x64xbf16>
    %281 = arith.truncf %279 : vector<5x64xf32> to vector<5x64xbf16>
    %cst_95 = arith.constant dense<0.000000e+00> : vector<5x5xf32>
    %282 = tpu.matmul %280, %281, %cst_95 {dimension_numbers = #tpu.dot_dimension_numbers<[1], [1], [0], [0], [0, 0, 1, 0], [], []>} : vector<5x64xbf16>, vector<5x64xbf16>, vector<5x5xf32> -> vector<5x5xf32>
    %cst_96 = arith.constant 1.250000e-01 : f32
    %283 = vector.broadcast %cst_96 : f32 to vector<5x5xf32>
    %284 = arith.mulf %282, %283 : vector<5x5xf32>
    %cst_97 = arith.constant dense<0xFF800000> : vector<5xf32>
    %285 = vector.multi_reduction <maximumf>, %284, %cst_97 [1] : vector<5x5xf32> to vector<5xf32>
    %286 = vector.shape_cast %285 : vector<5xf32> to vector<5x1xf32>
    %287 = vector.broadcast %286 : vector<5x1xf32> to vector<5x5xf32>
    %288 = arith.subf %284, %287 : vector<5x5xf32>
    %289 = math.exp %288 : vector<5x5xf32>
    %cst_98 = arith.constant dense<0.000000e+00> : vector<5xf32>
    %290 = vector.multi_reduction <add>, %289, %cst_98 [1] : vector<5x5xf32> to vector<5xf32>
    %291 = vector.shape_cast %290 : vector<5xf32> to vector<5x1xf32>
    %292 = tpu.reciprocal %291 {approx = true} : vector<5x1xf32> -> vector<5x1xf32>
    %293 = vector.broadcast %292 : vector<5x1xf32> to vector<5x5xf32>
    %294 = arith.mulf %289, %293 : vector<5x5xf32>
    %295 = arith.truncf %294 : vector<5x5xf32> to vector<5x5xbf16>
    %296 = vector.extract_strided_slice %276 {offsets = [0, 0], sizes = [5, 64], strides = [1, 1]} : vector<5x128xf32> to vector<5x64xf32>
    %297 = arith.truncf %296 : vector<5x64xf32> to vector<5x64xbf16>
    %cst_99 = arith.constant dense<0.000000e+00> : vector<5x64xf32>
    %298 = tpu.matmul %295, %297, %cst_99 {dimension_numbers = #tpu.dot_dimension_numbers<[1], [0], [0], [1], [0, 0, 1, 1], [], []>} : vector<5x5xbf16>, vector<5x64xbf16>, vector<5x64xf32> -> vector<5x64xf32>
    %299 = arith.addf %277, %298 : vector<5x64xf32>
    %300 = vector.extract_strided_slice %272 {offsets = [0, 64], sizes = [5, 64], strides = [1, 1]} : vector<5x256xf32> to vector<5x64xf32>
    %301 = vector.extract_strided_slice %272 {offsets = [0, 192], sizes = [5, 64], strides = [1, 1]} : vector<5x256xf32> to vector<5x64xf32>
    %302 = arith.truncf %300 : vector<5x64xf32> to vector<5x64xbf16>
    %303 = arith.truncf %301 : vector<5x64xf32> to vector<5x64xbf16>
    %cst_100 = arith.constant dense<0.000000e+00> : vector<5x5xf32>
    %304 = tpu.matmul %302, %303, %cst_100 {dimension_numbers = #tpu.dot_dimension_numbers<[1], [1], [0], [0], [0, 0, 1, 0], [], []>} : vector<5x64xbf16>, vector<5x64xbf16>, vector<5x5xf32> -> vector<5x5xf32>
    %cst_101 = arith.constant 1.250000e-01 : f32
    %305 = vector.broadcast %cst_101 : f32 to vector<5x5xf32>
    %306 = arith.mulf %304, %305 : vector<5x5xf32>
    %cst_102 = arith.constant dense<0xFF800000> : vector<5xf32>
    %307 = vector.multi_reduction <maximumf>, %306, %cst_102 [1] : vector<5x5xf32> to vector<5xf32>
    %308 = vector.shape_cast %307 : vector<5xf32> to vector<5x1xf32>
    %309 = vector.broadcast %308 : vector<5x1xf32> to vector<5x5xf32>
    %310 = arith.subf %306, %309 : vector<5x5xf32>
    %311 = math.exp %310 : vector<5x5xf32>
    %cst_103 = arith.constant dense<0.000000e+00> : vector<5xf32>
    %312 = vector.multi_reduction <add>, %311, %cst_103 [1] : vector<5x5xf32> to vector<5xf32>
    %313 = vector.shape_cast %312 : vector<5xf32> to vector<5x1xf32>
    %314 = tpu.reciprocal %313 {approx = true} : vector<5x1xf32> -> vector<5x1xf32>
    %315 = vector.broadcast %314 : vector<5x1xf32> to vector<5x5xf32>
    %316 = arith.mulf %311, %315 : vector<5x5xf32>
    %317 = arith.truncf %316 : vector<5x5xf32> to vector<5x5xbf16>
    %318 = vector.extract_strided_slice %276 {offsets = [0, 64], sizes = [5, 64], strides = [1, 1]} : vector<5x128xf32> to vector<5x64xf32>
    %319 = arith.truncf %318 : vector<5x64xf32> to vector<5x64xbf16>
    %cst_104 = arith.constant dense<0.000000e+00> : vector<5x64xf32>
    %320 = tpu.matmul %317, %319, %cst_104 {dimension_numbers = #tpu.dot_dimension_numbers<[1], [0], [0], [1], [0, 0, 1, 1], [], []>} : vector<5x5xbf16>, vector<5x64xbf16>, vector<5x64xf32> -> vector<5x64xf32>
    %321 = arith.addf %299, %320 : vector<5x64xf32>
    %322 = arith.addf %238, %321 : vector<5x64xf32>
    %323 = vector.broadcast %244 : vector<1x64xf32> to vector<5x64xf32>
    %324 = arith.addf %322, %323 : vector<5x64xf32>
    %cst_105 = arith.constant dense<0.000000e+00> : vector<5xf32>
    %325 = vector.multi_reduction <add>, %324, %cst_105 [1] : vector<5x64xf32> to vector<5xf32>
    %326 = vector.shape_cast %325 : vector<5xf32> to vector<5x1xf32>
    %cst_106 = arith.constant 6.400000e+01 : f32
    %327 = vector.broadcast %cst_106 : f32 to vector<5x1xf32>
    %328 = arith.divf %326, %327 : vector<5x1xf32>
    %329 = vector.broadcast %328 : vector<5x1xf32> to vector<5x64xf32>
    %330 = arith.subf %324, %329 : vector<5x64xf32>
    %331 = arith.mulf %330, %330 : vector<5x64xf32>
    %cst_107 = arith.constant dense<0.000000e+00> : vector<5xf32>
    %332 = vector.multi_reduction <add>, %331, %cst_107 [1] : vector<5x64xf32> to vector<5xf32>
    %333 = vector.shape_cast %332 : vector<5xf32> to vector<5x1xf32>
    %cst_108 = arith.constant 6.400000e+01 : f32
    %334 = vector.broadcast %cst_108 : f32 to vector<5x1xf32>
    %335 = arith.divf %333, %334 : vector<5x1xf32>
    %cst_109 = arith.constant 9.99999974E-6 : f32
    %336 = vector.broadcast %cst_109 : f32 to vector<5x1xf32>
    %337 = arith.addf %335, %336 : vector<5x1xf32>
    %338 = math.rsqrt %337 : vector<5x1xf32>
    %339 = vector.broadcast %338 : vector<5x1xf32> to vector<5x64xf32>
    %340 = arith.mulf %330, %339 : vector<5x64xf32>
    %341 = vector.broadcast %245 : vector<1x64xf32> to vector<5x64xf32>
    %342 = arith.mulf %340, %341 : vector<5x64xf32>
    %343 = vector.broadcast %246 : vector<1x64xf32> to vector<5x64xf32>
    %344 = arith.addf %342, %343 : vector<5x64xf32>
    %345 = arith.truncf %344 : vector<5x64xf32> to vector<5x64xbf16>
    %346 = arith.index_cast %c1_i32 : i32 to index
    %c0_110 = arith.constant 0 : index
    %c0_111 = arith.constant 0 : index
    %347 = vector.load %arg9[%346, %c0_110, %c0_111] : memref<2x64x128xbf16, #tpu.memory_space<vmem>>, vector<1x64x128xbf16>
    %348 = vector.shape_cast %347 : vector<1x64x128xbf16> to vector<64x128xbf16>
    %cst_112 = arith.constant dense<0.000000e+00> : vector<5x128xf32>
    %349 = tpu.matmul %345, %348, %cst_112 {dimension_numbers = #tpu.dot_dimension_numbers<[1], [0], [0], [1], [0, 0, 1, 1], [], []>} : vector<5x64xbf16>, vector<64x128xbf16>, vector<5x128xf32> -> vector<5x128xf32>
    %350 = arith.index_cast %c1_i32 : i32 to index
    %c0_113 = arith.constant 0 : index
    %c0_114 = arith.constant 0 : index
    %351 = vector.load %arg10[%350, %c0_113, %c0_114] : memref<2x1x128xf32, #tpu.memory_space<vmem>>, vector<1x1x128xf32>
    %352 = vector.shape_cast %351 : vector<1x1x128xf32> to vector<1x128xf32>
    %353 = vector.broadcast %352 : vector<1x128xf32> to vector<5x128xf32>
    %354 = arith.addf %349, %353 : vector<5x128xf32>
    %cst_115 = arith.constant 5.000000e-01 : f32
    %355 = vector.broadcast %cst_115 : f32 to vector<5x128xf32>
    %356 = arith.mulf %355, %354 : vector<5x128xf32>
    %cst_116 = arith.constant 0.707106769 : f32
    %357 = vector.broadcast %cst_116 : f32 to vector<5x128xf32>
    %358 = arith.mulf %354, %357 : vector<5x128xf32>
    %cst_117 = arith.constant -4.000000e+00 : f32
    %cst_118 = arith.constant 4.000000e+00 : f32
    %359 = vector.broadcast %cst_117 : f32 to vector<5x128xf32>
    %360 = arith.maximumf %359, %358 : vector<5x128xf32>
    %361 = vector.broadcast %cst_118 : f32 to vector<5x128xf32>
    %362 = arith.minimumf %361, %360 : vector<5x128xf32>
    %363 = arith.mulf %362, %362 : vector<5x128xf32>
    %cst_119 = arith.constant 0.000000e+00 : f32
    %364 = vector.broadcast %cst_119 : f32 to vector<5x128xf32>
    %365 = arith.mulf %364, %363 : vector<5x128xf32>
    %cst_120 = arith.constant 2.29050653E-4 : f32
    %366 = vector.broadcast %cst_120 : f32 to vector<5x128xf32>
    %367 = arith.addf %365, %366 : vector<5x128xf32>
    %368 = arith.mulf %367, %363 : vector<5x128xf32>
    %cst_121 = arith.constant 0.00340829091 : f32
    %369 = vector.broadcast %cst_121 : f32 to vector<5x128xf32>
    %370 = arith.addf %368, %369 : vector<5x128xf32>
    %371 = arith.mulf %370, %363 : vector<5x128xf32>
    %cst_122 = arith.constant 0.0509556942 : f32
    %372 = vector.broadcast %cst_122 : f32 to vector<5x128xf32>
    %373 = arith.addf %371, %372 : vector<5x128xf32>
    %374 = arith.mulf %373, %363 : vector<5x128xf32>
    %cst_123 = arith.constant 0.185208321 : f32
    %375 = vector.broadcast %cst_123 : f32 to vector<5x128xf32>
    %376 = arith.addf %374, %375 : vector<5x128xf32>
    %377 = arith.mulf %376, %363 : vector<5x128xf32>
    %cst_124 = arith.constant 1.12837911 : f32
    %378 = vector.broadcast %cst_124 : f32 to vector<5x128xf32>
    %379 = arith.addf %377, %378 : vector<5x128xf32>
    %380 = arith.mulf %362, %379 : vector<5x128xf32>
    %cst_125 = arith.constant 0.000000e+00 : f32
    %381 = vector.broadcast %cst_125 : f32 to vector<5x128xf32>
    %382 = arith.mulf %381, %363 : vector<5x128xf32>
    %cst_126 = arith.constant -1.17916031E-7 : f32
    %383 = vector.broadcast %cst_126 : f32 to vector<5x128xf32>
    %384 = arith.addf %382, %383 : vector<5x128xf32>
    %385 = arith.mulf %384, %363 : vector<5x128xf32>
    %cst_127 = arith.constant 2.35479656E-5 : f32
    %386 = vector.broadcast %cst_127 : f32 to vector<5x128xf32>
    %387 = arith.addf %385, %386 : vector<5x128xf32>
    %388 = arith.mulf %387, %363 : vector<5x128xf32>
    %cst_128 = arith.constant 0.00101796258 : f32
    %389 = vector.broadcast %cst_128 : f32 to vector<5x128xf32>
    %390 = arith.addf %388, %389 : vector<5x128xf32>
    %391 = arith.mulf %390, %363 : vector<5x128xf32>
    %cst_129 = arith.constant 0.0140704699 : f32
    %392 = vector.broadcast %cst_129 : f32 to vector<5x128xf32>
    %393 = arith.addf %391, %392 : vector<5x128xf32>
    %394 = arith.mulf %393, %363 : vector<5x128xf32>
    %cst_130 = arith.constant 0.110985048 : f32
    %395 = vector.broadcast %cst_130 : f32 to vector<5x128xf32>
    %396 = arith.addf %394, %395 : vector<5x128xf32>
    %397 = arith.mulf %396, %363 : vector<5x128xf32>
    %cst_131 = arith.constant 0.497469246 : f32
    %398 = vector.broadcast %cst_131 : f32 to vector<5x128xf32>
    %399 = arith.addf %397, %398 : vector<5x128xf32>
    %400 = arith.mulf %399, %363 : vector<5x128xf32>
    %cst_132 = arith.constant 1.000000e+00 : f32
    %401 = vector.broadcast %cst_132 : f32 to vector<5x128xf32>
    %402 = arith.addf %400, %401 : vector<5x128xf32>
    %403 = tpu.reciprocal %402 {approx = true} : vector<5x128xf32> -> vector<5x128xf32>
    %404 = arith.mulf %380, %403 : vector<5x128xf32>
    %cst_133 = arith.constant 1.000000e+00 : f32
    %405 = vector.broadcast %cst_133 : f32 to vector<5x128xf32>
    %406 = arith.addf %405, %404 : vector<5x128xf32>
    %407 = arith.mulf %356, %406 : vector<5x128xf32>
    %408 = arith.truncf %407 : vector<5x128xf32> to vector<5x128xbf16>
    %409 = arith.index_cast %c1_i32 : i32 to index
    %c0_134 = arith.constant 0 : index
    %c0_135 = arith.constant 0 : index
    %410 = vector.load %arg11[%409, %c0_134, %c0_135] : memref<2x128x64xbf16, #tpu.memory_space<vmem>>, vector<1x128x64xbf16>
    %411 = vector.shape_cast %410 : vector<1x128x64xbf16> to vector<128x64xbf16>
    %cst_136 = arith.constant dense<0.000000e+00> : vector<5x64xf32>
    %412 = tpu.matmul %408, %411, %cst_136 {dimension_numbers = #tpu.dot_dimension_numbers<[1], [0], [0], [1], [0, 0, 1, 1], [], []>} : vector<5x128xbf16>, vector<128x64xbf16>, vector<5x64xf32> -> vector<5x64xf32>
    %413 = arith.addf %324, %412 : vector<5x64xf32>
    %414 = vector.broadcast %247 : vector<1x64xf32> to vector<5x64xf32>
    %415 = arith.addf %413, %414 : vector<5x64xf32>
    %c2_i32 = arith.constant 2 : i32
    %416 = vector.extract_strided_slice %415 {offsets = [0, 0], sizes = [1, 64], strides = [1, 1]} : vector<5x64xf32> to vector<1x64xf32>
    %cst_137 = arith.constant dense<0.000000e+00> : vector<1xf32>
    %417 = vector.multi_reduction <add>, %416, %cst_137 [1] : vector<1x64xf32> to vector<1xf32>
    %418 = vector.shape_cast %417 : vector<1xf32> to vector<1x1xf32>
    %cst_138 = arith.constant 6.400000e+01 : f32
    %419 = vector.broadcast %cst_138 : f32 to vector<1x1xf32>
    %420 = arith.divf %418, %419 : vector<1x1xf32>
    %421 = vector.broadcast %420 : vector<1x1xf32> to vector<1x64xf32>
    %422 = arith.subf %416, %421 : vector<1x64xf32>
    %423 = arith.mulf %422, %422 : vector<1x64xf32>
    %cst_139 = arith.constant dense<0.000000e+00> : vector<1xf32>
    %424 = vector.multi_reduction <add>, %423, %cst_139 [1] : vector<1x64xf32> to vector<1xf32>
    %425 = vector.shape_cast %424 : vector<1xf32> to vector<1x1xf32>
    %cst_140 = arith.constant 6.400000e+01 : f32
    %426 = vector.broadcast %cst_140 : f32 to vector<1x1xf32>
    %427 = arith.divf %425, %426 : vector<1x1xf32>
    %cst_141 = arith.constant 9.99999974E-6 : f32
    %428 = vector.broadcast %cst_141 : f32 to vector<1x1xf32>
    %429 = arith.addf %427, %428 : vector<1x1xf32>
    %430 = math.rsqrt %429 : vector<1x1xf32>
    %431 = vector.broadcast %430 : vector<1x1xf32> to vector<1x64xf32>
    %432 = arith.mulf %422, %431 : vector<1x64xf32>
    %433 = arith.mulf %432, %5 : vector<1x64xf32>
    %434 = arith.addf %433, %6 : vector<1x64xf32>
    %435 = arith.truncf %434 : vector<1x64xf32> to vector<1x64xbf16>
    %c0_142 = arith.constant 0 : index
    %c0_143 = arith.constant 0 : index
    %436 = vector.load %arg14[%c0_142, %c0_143] : memref<4x128xf32, #tpu.memory_space<vmem>>, vector<4x128xf32>
    %c0_144 = arith.constant 0 : index
    %c0_145 = arith.constant 0 : index
    %437 = vector.load %arg12[%c0_144, %c0_145] : memref<64x128xbf16, #tpu.memory_space<vmem>>, vector<64x128xbf16>
    %cst_146 = arith.constant dense<0.000000e+00> : vector<1x128xf32>
    %438 = tpu.matmul %435, %437, %cst_146 {dimension_numbers = #tpu.dot_dimension_numbers<[1], [0], [0], [1], [0, 0, 1, 1], [], []>} : vector<1x64xbf16>, vector<64x128xbf16>, vector<1x128xf32> -> vector<1x128xf32>
    %439 = vector.extract_strided_slice %436 {offsets = [0, 0], sizes = [1, 128], strides = [1, 1]} : vector<4x128xf32> to vector<1x128xf32>
    %440 = arith.addf %438, %439 : vector<1x128xf32>
    %441 = arith.truncf %440 : vector<1x128xf32> to vector<1x128xbf16>
    %c0_147 = arith.constant 0 : index
    %c0_148 = arith.constant 0 : index
    %c0_149 = arith.constant 0 : index
    %442 = vector.load %arg13[%c0_147, %c0_148, %c0_149] : memref<3x128x128xbf16, #tpu.memory_space<vmem>>, vector<1x128x128xbf16>
    %443 = vector.shape_cast %442 : vector<1x128x128xbf16> to vector<128x128xbf16>
    %cst_150 = arith.constant dense<0.000000e+00> : vector<1x128xf32>
    %444 = tpu.matmul %441, %443, %cst_150 {dimension_numbers = #tpu.dot_dimension_numbers<[1], [0], [0], [1], [0, 0, 1, 1], [], []>} : vector<1x128xbf16>, vector<128x128xbf16>, vector<1x128xf32> -> vector<1x128xf32>
    %445 = vector.extract_strided_slice %436 {offsets = [1, 0], sizes = [1, 128], strides = [1, 1]} : vector<4x128xf32> to vector<1x128xf32>
    %446 = arith.addf %444, %445 : vector<1x128xf32>
    %cst_151 = arith.constant 0.000000e+00 : f32
    %447 = vector.broadcast %cst_151 : f32 to vector<1x128xf32>
    %448 = arith.maximumf %446, %447 : vector<1x128xf32>
    %449 = arith.truncf %448 : vector<1x128xf32> to vector<1x128xbf16>
    %c1_152 = arith.constant 1 : index
    %c0_153 = arith.constant 0 : index
    %c0_154 = arith.constant 0 : index
    %450 = vector.load %arg13[%c1_152, %c0_153, %c0_154] : memref<3x128x128xbf16, #tpu.memory_space<vmem>>, vector<1x128x128xbf16>
    %451 = vector.shape_cast %450 : vector<1x128x128xbf16> to vector<128x128xbf16>
    %cst_155 = arith.constant dense<0.000000e+00> : vector<1x128xf32>
    %452 = tpu.matmul %449, %451, %cst_155 {dimension_numbers = #tpu.dot_dimension_numbers<[1], [0], [0], [1], [0, 0, 1, 1], [], []>} : vector<1x128xbf16>, vector<128x128xbf16>, vector<1x128xf32> -> vector<1x128xf32>
    %453 = vector.extract_strided_slice %436 {offsets = [2, 0], sizes = [1, 128], strides = [1, 1]} : vector<4x128xf32> to vector<1x128xf32>
    %454 = arith.addf %452, %453 : vector<1x128xf32>
    %cst_156 = arith.constant 0.000000e+00 : f32
    %455 = vector.broadcast %cst_156 : f32 to vector<1x128xf32>
    %456 = arith.maximumf %454, %455 : vector<1x128xf32>
    %457 = arith.truncf %456 : vector<1x128xf32> to vector<1x128xbf16>
    %c2 = arith.constant 2 : index
    %c0_157 = arith.constant 0 : index
    %c0_158 = arith.constant 0 : index
    %458 = vector.load %arg13[%c2, %c0_157, %c0_158] : memref<3x128x128xbf16, #tpu.memory_space<vmem>>, vector<1x128x128xbf16>
    %459 = vector.shape_cast %458 : vector<1x128x128xbf16> to vector<128x128xbf16>
    %cst_159 = arith.constant dense<0.000000e+00> : vector<1x128xf32>
    %460 = tpu.matmul %457, %459, %cst_159 {dimension_numbers = #tpu.dot_dimension_numbers<[1], [0], [0], [1], [0, 0, 1, 1], [], []>} : vector<1x128xbf16>, vector<128x128xbf16>, vector<1x128xf32> -> vector<1x128xf32>
    %461 = vector.extract_strided_slice %436 {offsets = [3, 0], sizes = [1, 128], strides = [1, 1]} : vector<4x128xf32> to vector<1x128xf32>
    %462 = arith.addf %460, %461 : vector<1x128xf32>
    %c0_160 = arith.constant 0 : index
    %c0_161 = arith.constant 0 : index
    %c0_162 = arith.constant 0 : index
    %463 = vector.load %arg15[%c0_160, %c0_161, %c0_162] : memref<1x1x128xf32, #tpu.memory_space<vmem>>, vector<1x1x128xf32>
    %464 = vector.shape_cast %463 : vector<1x1x128xf32> to vector<1x128xf32>
    %465 = vector.shape_cast %462 : vector<1x128xf32> to vector<1x1x128xf32>
    tpu.vector_store %arg15[%c0_160, %c0_161, %c0_162], %465 {strides = array<i32>} : memref<1x1x128xf32, #tpu.memory_space<vmem>>, vector<1x1x128xf32>,
    return
  }
  func.func @transform_0(%arg0: i32) -> (i32, i32, i32) {
    %c0_i32 = arith.constant 0 : i32
    %c0_i32_0 = arith.constant 0 : i32
    %c0_i32_1 = arith.constant 0 : i32
    return %arg0, %c0_i32, %c0_i32_0 : i32, i32, i32
  }
  func.func @transform_1(%arg0: i32) -> (i32, i32) {
    %c0_i32 = arith.constant 0 : i32
    %c0_i32_0 = arith.constant 0 : i32
    %c0_i32_1 = arith.constant 0 : i32
    return %c0_i32, %c0_i32_0 : i32, i32
  }
  func.func @transform_2(%arg0: i32) -> (i32, i32) {
    %c0_i32 = arith.constant 0 : i32
    %c0_i32_0 = arith.constant 0 : i32
    %c0_i32_1 = arith.constant 0 : i32
    return %c0_i32, %c0_i32_0 : i32, i32
  }
  func.func @transform_3(%arg0: i32) -> (i32, i32) {
    %c0_i32 = arith.constant 0 : i32
    %c0_i32_0 = arith.constant 0 : i32
    %c0_i32_1 = arith.constant 0 : i32
    return %c0_i32, %c0_i32_0 : i32, i32
  }
  func.func @transform_4(%arg0: i32) -> (i32, i32) {
    %c0_i32 = arith.constant 0 : i32
    %c0_i32_0 = arith.constant 0 : i32
    %c0_i32_1 = arith.constant 0 : i32
    return %c0_i32, %c0_i32_0 : i32, i32
  }
  func.func @transform_5(%arg0: i32) -> (i32, i32, i32) {
    %c0_i32 = arith.constant 0 : i32
    %c0_i32_0 = arith.constant 0 : i32
    %c0_i32_1 = arith.constant 0 : i32
    %c0_i32_2 = arith.constant 0 : i32
    return %c0_i32, %c0_i32_0, %c0_i32_1 : i32, i32, i32
  }
  func.func @transform_6(%arg0: i32) -> (i32, i32, i32) {
    %c0_i32 = arith.constant 0 : i32
    %c0_i32_0 = arith.constant 0 : i32
    %c0_i32_1 = arith.constant 0 : i32
    %c0_i32_2 = arith.constant 0 : i32
    return %c0_i32, %c0_i32_0, %c0_i32_1 : i32, i32, i32
  }
  func.func @transform_7(%arg0: i32) -> (i32, i32, i32) {
    %c0_i32 = arith.constant 0 : i32
    %c0_i32_0 = arith.constant 0 : i32
    %c0_i32_1 = arith.constant 0 : i32
    %c0_i32_2 = arith.constant 0 : i32
    return %c0_i32, %c0_i32_0, %c0_i32_1 : i32, i32, i32
  }
  func.func @transform_8(%arg0: i32) -> (i32, i32, i32) {
    %c0_i32 = arith.constant 0 : i32
    %c0_i32_0 = arith.constant 0 : i32
    %c0_i32_1 = arith.constant 0 : i32
    %c0_i32_2 = arith.constant 0 : i32
    return %c0_i32, %c0_i32_0, %c0_i32_1 : i32, i32, i32
  }
  func.func @transform_9(%arg0: i32) -> (i32, i32, i32) {
    %c0_i32 = arith.constant 0 : i32
    %c0_i32_0 = arith.constant 0 : i32
    %c0_i32_1 = arith.constant 0 : i32
    %c0_i32_2 = arith.constant 0 : i32
    return %c0_i32, %c0_i32_0, %c0_i32_1 : i32, i32, i32
  }
  func.func @transform_10(%arg0: i32) -> (i32, i32, i32) {
    %c0_i32 = arith.constant 0 : i32
    %c0_i32_0 = arith.constant 0 : i32
    %c0_i32_1 = arith.constant 0 : i32
    %c0_i32_2 = arith.constant 0 : i32
    return %c0_i32, %c0_i32_0, %c0_i32_1 : i32, i32, i32
  }
  func.func @transform_11(%arg0: i32) -> (i32, i32) {
    %c0_i32 = arith.constant 0 : i32
    %c0_i32_0 = arith.constant 0 : i32
    %c0_i32_1 = arith.constant 0 : i32
    return %c0_i32, %c0_i32_0 : i32, i32
  }
  func.func @transform_12(%arg0: i32) -> (i32, i32, i32) {
    %c0_i32 = arith.constant 0 : i32
    %c0_i32_0 = arith.constant 0 : i32
    %c0_i32_1 = arith.constant 0 : i32
    %c0_i32_2 = arith.constant 0 : i32
    return %c0_i32, %c0_i32_0, %c0_i32_1 : i32, i32, i32
  }
  func.func @transform_13(%arg0: i32) -> (i32, i32) {
    %c0_i32 = arith.constant 0 : i32
    %c0_i32_0 = arith.constant 0 : i32
    %c0_i32_1 = arith.constant 0 : i32
    return %c0_i32, %c0_i32_0 : i32, i32
  }
  func.func @transform_14(%arg0: i32) -> (i32, i32, i32) {
    %c0_i32 = arith.constant 0 : i32
    %c0_i32_0 = arith.constant 0 : i32
    %c0_i32_1 = arith.constant 0 : i32
    return %arg0, %c0_i32, %c0_i32_0 : i32, i32, i32
  }
}

</mosaic_0001>

<bundles_post_ra>
// kernel: implicit_vit_kernel_forward.1
= control target key start
LH: loop header
LB: loop body
LE: loop exit
PB: predicated region body
PF: predicated region fallthrough
CT: control target
= control target key end

     0   :  { %s4036_s0 = inlined_call_operand.vmem [shape: f32[2,4,192], index: 0, kind: input, shape index: {}]   ;;  %s4037_s1 = inlined_call_operand.vmem [shape: f32[2,192], index: 1, kind: input, shape index: {}]   ;;  %s4038_s2 = inlined_call_operand.vmem [shape: bf16[192,64], index: 2, kind: input, shape index: {}]   ;;  %s4039_s3 = inlined_call_operand.vmem [shape: f32[6,64], index: 3, kind: input, shape index: {}]   ;;  %s4040_s4 = inlined_call_operand.vmem [shape: f32[4,64], index: 4, kind: input, shape index: {}]   ;;  %s4041_s5 = inlined_call_operand.vmem [shape: f32[2,6,64], index: 5, kind: input, shape index: {}]   ;;  %s4042_s6 = inlined_call_operand.vmem [shape: bf16[2,64,256], index: 6, kind: input, shape index: {}]   ;;  %s4043_s7 = inlined_call_operand.vmem [shape: bf16[2,64,128], index: 7, kind: input, shape index: {}]   ;;  %s4044_s8 = inlined_call_operand.vmem [shape: bf16[2,64,128], index: 8, kind: input, shape index: {}]   ;;  %s4045_s9 = inlined_call_operand.vmem [shape: f32[2,1,128], index: 9, kind: input, shape index: {}]   ;;  %s4046_s10 = inlined_call_operand.vmem [shape: bf16[2,128,64], index: 10, kind: input, shape index: {}]   ;;  %s4047_s11 = inlined_call_operand.vmem [shape: bf16[64,128], index: 11, kind: input, shape index: {}]   ;;  %s4048_s12 = inlined_call_operand.vmem [shape: bf16[3,128,128], index: 12, kind: input, shape index: {}]   ;;  %s4049_s13 = inlined_call_operand.vmem [shape: f32[4,128], index: 13, kind: input, shape index: {}]   ;;  %s4050_s14 = inlined_call_operand.hbm [shape: f32[2,1,128], index: 14, kind: output, shape index: {}]  }
   0x1   :  { %4053 = sst [smem:[#allocation7_spill]] %s4036_s0 }
   0x2   :  { %4054 = sst [smem:[#allocation8_spill]] %s4037_s1 }
   0x3   :  { %19 = vsyncpa [#allocation4], 0 }
   0x4   :  { %21 = vsyncpa [#allocation4 + $0x1], 0  ;;  %s3387_s29 = smov 0   ;;  %s3389_s30 = smov 0  }
   0x5   :  { %s3391_s15 = smov 0   ;;  %s3393_s16 = smov 0  }
   0x6 LB: > { %s3408_s17 = sadd.s32 4294967295, %s3303_s16   ;;  %s2579_s18 = sadd.s32 4294967294, %s3303_s16   ;;  %s3303_s16 = sphi %s3393_s16, %s4065_s16   ;;  %s3299_s15 = sphi %s3391_s15, %s4064_s15   ;;  %s3295_s30 = sphi %s3389_s30, %s4063_s30   ;;  %s3291_s29 = sphi %s3387_s29, %s4062_s29  }
   0x7   : > { %s3412_s19 = sadd.s32 1, %s3303_s16   ;;  %s333_s20 = sadd.s32 1, %s3299_s15 }
   0x8   : > { %s330_s21 = ssub.s32 %s3303_s16, %s3412_s19  ;;  %p343_p0 = scmp.ne.s32.totalorder %s3299_s15, %s3295_s30 }
   0x9   : > { %p331_p1 = scmp.eq.s32.totalorder %s330_s21, 0  ;;  %p344_p2 = scmp.eq.s32.totalorder %s3408_s17, 1 }
   0xa   : > { %p349_p3 = scmp.ne.s32.totalorder %s3295_s30, %s3291_s29  ;;  %p350_p4 = scmp.eq.s32.totalorder %s2579_s18, 1 }
   0xb   : > { %s3423_s22 = scalar_select %p331_p1, %s3299_s15, %s333_s20  }
   0xc   : > { %p3425_p5 = por %p344_p2, %p343_p0  ;;  %p3429_p6 = por %p350_p4, %p349_p3 }
   0xd   : > { %4055 = sst [smem:[#allocation6_spill]] %s3423_s22  ;;  %p2582_p7 = scmp.ge.s32.totalorder %s3303_s16, 1 }
   0xe   : > { %p415_p8 = scmp.lt.s32.totalorder %s3303_s16, 3 }
  0x10   : > { %p416_p9 = pnand %p2582_p7, %p415_p8 }
  0x11   : > { %p460_p10 = scmp.lt.s32.totalorder (!%p416_p9), %s3408_s17, 1  ;;  %vm472_vm0 = vcmask (!%p416_p9), 1043456   ;;  %s4058_s0 = sld [smem:[#allocation7_spill]] (!%p416_p9)  ;;  %vm474_vm1 = vcmask (!%p416_p9), 519168   ;;  %v3111_v5 = vld [vmem:[%s4038_s2] sm:$0xff] (!%p416_p9)   ;;  %v3305_v6 = vmov (!%p416_p9), 0   ;;  %v485_v13 = vlaneseq (!%p416_p9) }
  0x12   : > { %419 = sbr.rel (%p416_p9) target bundleno = 6490 (0x195a), region = 76  ;;  %669 = vmatprep.subr.bf16.mxu0 (!%p416_p9), %v3305_v6  ;;  %v3112_v7 = vld [vmem:[%s4038_s2 + $0x8] sm:$0xff] (!%p416_p9)   ;;  %848 = vmatprep.mubr.bf16.mxu1 (!%p416_p9), %v3305_v6  ;;  %v3113_v8 = vld [vmem:[%s4038_s2 + $0x10] sm:$0xff] (!%p416_p9)   ;;  %v3114_v9 = vld [vmem:[%s4038_s2 + $0x18] sm:$0xff] (!%p416_p9)   ;;  %v3306_v11 = vmov (!%p416_p9), 839922192  }
  0x13   : > { %670 = vmatpush1.bf16.msra.mxu0 (!%p416_p9), %v3111_v5  ;;  %v3115_v10 = vld [vmem:[%s4038_s2 + $0x20] sm:$0xff] (!%p416_p9)   ;;  %v483_v12 = vunpack.c.l.s4 (!%p416_p9), %v3306_v11  ;;  %v3464_v15 = vshrl.u32 (!%p416_p9), %v485_v13, 7  ;;  %v3116_v26 = vld [vmem:[%s4038_s2 + $0x28] sm:$0xff] (!%p416_p9)   ;;  %v3117_v27 = vld [vmem:[%s4038_s2 + $0x30] sm:$0xff] (!%p416_p9)   ;;  %s4059_s1 = sld [smem:[#allocation8_spill]] (!%p416_p9)  ;;  %vm665_vm2 = vcmask (!%p416_p9), 523264  }
  0x14   : > { %671 = vmatprep.subr.bf16.mxu0 (!%p416_p9), %v3305_v6  ;;  %v3118_v28 = vld [vmem:[%s4038_s2 + $0x38] sm:$0xff] (!%p416_p9)   ;;  %v3119_v29 = vld [vmem:[%s4038_s2 + $0x40] sm:$0xff] (!%p416_p9)   ;;  %v3120_v30 = vld [vmem:[%s4038_s2 + $0x48] sm:$0xff] (!%p416_p9)   ;;  %vm733_vm3 = vcmask (!%p416_p9), 519171   ;;  %vm740_vm4 = vcmask (!%p416_p9), 520192   ;;  %vm3308_vm5 = vmmov (!%p416_p9), 0  }
  0x15   : > { %v484_v14 = vunpack.c.0.s8 (!%p416_p9), %v483_v12  ;;  %v3121_v31 = vld [vmem:[%s4038_s2 + $0x50] sm:$0xff] (!%p416_p9)   ;;  %v3122_v32 = vld [vmem:[%s4038_s2 + $0x58] sm:$0xff] (!%p416_p9)   ;;  %v3497_v36 = vsub.s32 (!%p416_p9), 0, %v3464_v15  ;;  %v3500_v37 = vsub.s32 (!%p416_p9), 2, %v3464_v15  ;;  %v3506_v39 = vsub.s32 (!%p416_p9), 1, %v3464_v15  ;;  %s4051_s22 = smov (!%p416_p9), 64  }
  0x16   : > { %v3509_v40 = vsub.s32 (!%p416_p9), 3, %v3464_v15  ;;  %v3523_v59 = vld [vmem:[%s4039_s3] sm:$0x3f] (!%p416_p9)  ;;  %vm1064_vm6 = vcmask (!%p416_p9), 1041408   ;;  %vm1065_vm7 = vcmask (!%p416_p9), 1042432   ;;  %vm978_vm8 = vcmask (!%p416_p9), 36864  }
  0x17   : > { %672 = vmatpush1.bf16.msra.mxu0 (!%p416_p9), %v3112_v7  ;;  %v487_v16 = vsub.s32 (!%p416_p9), %v484_v14, %v3464_v15  ;;  %734 = vst.msk [vmem:[#allocation2 - $0x3] sm:$0x8] (!%p416_p9), %vm733_vm3, %v3523_v59  ;;  %v592_v60 = vrot.slane (!%p416_p9), %v3523_v59, %v3497_v36  ;;  %v726_v12 = vrot.slane (!%p416_p9), %v3523_v59, %v3506_v39  ;;  %vm1060_vm9 = vcmask (!%p416_p9), 39936   ;;  %s3311_s20 = smov (!%p416_p9), [#allocation3]  }
  0x18   : > { %673 = vmatprep.subr.bf16.mxu0 (!%p416_p9), %v3305_v6  ;;  %v731_v14 = vrot.slane (!%p416_p9), %v3523_v59, %v3500_v37  ;;  %vm2086_vm10 = vcmask (!%p416_p9), 516096   ;;  %s3245_s21 = sshll.u32 (!%p416_p9), %s3311_s20, 4  ;;  %s3246_s21 = int_to_ptr.vmem [resolvable:$false] %s3245_s21 }
  0x19   : > { %s461_s25 = scalar_select %p460_p10, %s3408_s17, 1  ;;  %v467_v38 = vld [vmem:[%s4059_s1] sm:$0xf] }
  0x1a   : > { %v517_v41 = vrot.slane %v467_v38, %v3497_v36  ;;  %v521_v42 = vrot.slane %v467_v38, %v3500_v37  ;;  %v540_v43 = vrot.slane %v467_v38, %v3506_v39  ;;  %v544_v44 = vrot.slane %v467_v38, %v3509_v40  ;;  %v3134_v38 = vld [vmem:[%s4042_s6 + $0x30] ss:$8 sps:$4 sm:$0xff]  }
  0x1b   : > { %s2770_s26 = sshll.u32 %s461_s25, 3  ;;  %674 = vmatpush1.bf16.msra.mxu0 %v3113_v8  ;;  %s458_s25 = sand.u32 1, %s3295_s30  }
  0x1c   : > { %s464_s18 = scalar_lea.vmem %s4058_s0, %s2770_s26  ;;  %675 = vmatprep.subr.bf16.mxu0 %v3305_v6  ;;  %v527_v45 = vrot.slane %v517_v41, %v3497_v36  ;;  %v531_v46 = vrot.slane %v521_v42, %v3497_v36  ;;  %v550_v47 = vrot.slane %v540_v43, %v3506_v39  ;;  %v554_v48 = vrot.slane %v544_v44, %v3506_v39  ;;  %v3575_v44 = vld [vmem:[%s4041_s5] sm:$0x3f]  ;;  %s4060_s0 = smov 64  }
  0x1d   : > { %v468_v0 = vld [vmem:[%s464_s18] sm:$0xff]  ;;  %s2767_s26 = sshll.u32 %s3408_s17, 4  ;;  %s459_s27 = scalar_lea.vmem [#allocation3], %s458_s25 }
  0x1e   : > { %v470_v1 = vcombine.high %v468_v0, %v468_v0  ;;  %v473_v2 = vsel %vm472_vm0, %v468_v0, 0.0  ;;  %v534_v51 = vcombine.low %v527_v45, %v531_v46  ;;  %v557_v53 = vcombine.low %v550_v47, %v554_v48  ;;  %s2524_s28 = sshll.u32 %s459_s27, 4  ;;  %s3994_s1 = scalar_lea.hbm %s4050_s14, %s2767_s26  ;;  %s3996_s28 = int_to_ptr.vmem [resolvable:$true] %s2524_s28 }
  0x1f   : > { %676 = vmatpush1.bf16.msra.mxu0 %v3114_v9  ;;  %v757_v45 = vrot.slane %v3575_v44, %v3497_v36  ;;  %v762_v48 = vrot.slane %v3575_v44, %v3506_v39  ;;  %s3241_s17 = scalar_lea.vmem %s3996_s28, 16  ;;  %s3247_s18 = scalar_lea.vmem %s3246_s21, 32 }
  0x20   : > { %v475_v3 = vsel %vm474_vm1, %v470_v1, 0.0  ;;  %677 = vmatprep.subr.bf16.mxu0 %v3305_v6  ;;  %p3242_p11 = scmp.ne.s32.totalorder %s3996_s28, %s3241_s17  ;;  %p3248_p0 = scmp.lt.s32.totalorder %s3996_s28, %s3246_s21 }
  0x21   : > { %v476_v4 = vadd.f32 %v475_v3, %v473_v2  ;;  %p3249_p1 = scmp.lt.s32.totalorder %s3247_s18, %s3241_s17 }
  0x22   : > { %p3243_p12 = pnand %p3242_p11, %p3425_p5 }
  0x23   : > { %477 = vadd.xlane.f32.xlu0 %v476_v4  ;;  %678 = vmatpush1.bf16.msra.mxu0 %v3115_v10  ;;  %p3250_p2 = por %p3249_p1, %p3248_p0 }
  0x24   : > { %679 = vmatprep.subr.bf16.mxu0 %v3305_v6  ;;  %p3244_p13 = pneg %p3243_p12 }
  0x26   : > { %p3251_p3 = pnand %p3250_p2, %p3244_p13 }
  0x27   : > { %680 = vmatpush1.bf16.msra.mxu0 %v3116_v26 }
  0x28   : > { %681 = vmatprep.subr.bf16.mxu0 %v3305_v6 }
  0x2b   : > { %682 = vmatpush1.bf16.msra.mxu0 %v3117_v27 }
  0x2c   : > { %683 = vmatprep.subr.bf16.mxu0 %v3305_v6 }
  0x2f   : > { %684 = vmatpush1.bf16.msra.mxu0 %v3118_v28  ;;  %v3123_v28 = vld [vmem:[%s4042_s6 + $0x4] ss:$8 sps:$4 sm:$0xff]  }
  0x30   : > { %685 = vmatprep.subr.bf16.mxu0 %v3305_v6  ;;  %816 = vmatprep.subr.bf16.mxu1 %v3123_v28 }
  0x33   : > { %686 = vmatpush1.bf16.msra.mxu0 %v3119_v29  ;;  %v3125_v29 = vld [vmem:[%s4042_s6] ss:$8 sps:$4 sm:$0xff]  }
  0x34   : > { %687 = vmatprep.subr.bf16.mxu0 %v3305_v6  ;;  %817 = vmatpush1.bf16.msra.mxu1 %v3125_v29 }
  0x37   : > { %688 = vmatpush1.bf16.msra.mxu0 %v3120_v30  ;;  %v3126_v30 = vld [vmem:[%s4042_s6 + $0x14] ss:$8 sps:$4 sm:$0xff]  }
  0x38   : > { %689 = vmatprep.subr.bf16.mxu0 %v3305_v6  ;;  %818 = vmatprep.subr.bf16.mxu1 %v3126_v30 }
  0x3b   : > { %690 = vmatpush1.bf16.msra.mxu0 %v3121_v31  ;;  %v3128_v31 = vld [vmem:[%s4042_s6 + $0x10] ss:$8 sps:$4 sm:$0xff]  }
  0x3c   : > { %691 = vmatprep.subr.bf16.mxu0 %v3305_v6  ;;  %819 = vmatpush1.bf16.msra.mxu1 %v3128_v31 }
  0x3f   : > { %692 = vmatpush1.bf16.msra.mxu0 %v3122_v32  ;;  %v3307_v32 = vmov 0.0  }
  0x40   : > { %2881 = vmatprep.subr.bf16.mxu0 %v3307_v32 }
  0xb0   : > { %v478_v17 = vpop.xlane.xlu0 %477 }
  0xb1   : > { %v480_v18 = vmul.f32 0.0052083335, %v478_v17 }
  0xb3   : > { %v488_v19 = vrot.slane %v480_v18, %v487_v16  ;;  %v735_v18 = vld [vmem:[%s4040_s4] sm:$0xf] }
  0xb5   : > { %v490_v20 = vsub.f32 %v468_v0, %v488_v19 }
  0xb7   : > { %v491_v21 = vmul.f32 %v490_v20, %v490_v20 }
  0xb9   : > { %v493_v22 = vcombine.high %v491_v21, %v491_v21  ;;  %v495_v23 = vsel %vm472_vm0, %v491_v21, 0.0 }
  0xbb   : > { %v496_v24 = vsel %vm474_vm1, %v493_v22, 0.0 }
  0xbc   : > { %v497_v25 = vadd.f32 %v496_v24, %v495_v23 }
  0xbe   : > { %498 = vadd.xlane.f32.xlu0 %v497_v25 }
 0x14b   : > { %v499_v33 = vpop.xlane.xlu0 %498 }
 0x14c   : > { %v500_v34 = vmul.f32 0.0052083335, %v499_v33  ;;  %v3129_v33 = vld [vmem:[%s4042_s6 + $0x24] ss:$8 sps:$4 sm:$0xff]  }
 0x14d   : > { %820 = vmatprep.subr.bf16.mxu1 %v3129_v33 }
 0x14e   : > { %v501_v35 = vadd.f32 1e-05, %v500_v34  ;;  %v3131_v34 = vld [vmem:[%s4042_s6 + $0x20] ss:$8 sps:$4 sm:$0xff]  }
 0x14f   : > { %821 = vmatpush1.bf16.msra.mxu1 %v3131_v34 }
 0x150   : > { %3207 = vrsqrt.f32 %v501_v35  ;;  %v3132_v35 = vld [vmem:[%s4042_s6 + $0x34] ss:$8 sps:$4 sm:$0xff]  }
 0x151   : > { %822 = vmatprep.subr.bf16.mxu1 %v3132_v35 }
 0x153   : > { %823 = vmatpush1.bf16.msra.mxu1 %v3134_v38 }
 0x154   : > { %2857 = vmatprep.subr.bf16.mxu1 %v3307_v32 }
 0x15a   : > { %v3208_v49 = vpop.eup %3207 }
 0x15b   : > { %v510_v50 = vrot.slane %v3208_v49, %v487_v16 }
 0x15d   : > { %v512_v52 = vmul.f32 %v510_v50, %v490_v20 }
 0x15f   : > { %v536_v54 = vmul.f32 %v534_v51, %v512_v52  ;;  %v3135_v51 = vld [vmem:[%s4043_s7] sm:$0xff]  }
 0x161   : > { %v559_v55 = vadd.f32 %v557_v53, %v536_v54  ;;  %v3136_v53 = vld [vmem:[%s4043_s7 + $0x8] sm:$0xff]   ;;  %v3137_v54 = vld [vmem:[%s4043_s7 + $0x10] sm:$0xff]  }
 0x163   : > { %v561_v56 = vcombine.high %v559_v55, %v559_v55  ;;  %v563_v58 = vpack.c.bf16 %v559_v55, %v559_v55  ;;  %v3138_v55 = vld [vmem:[%s4043_s7 + $0x18] sm:$0xff]  }
 0x165   : > { %v564_v57 = vpack.c.bf16 %v561_v56, %v561_v56 }
 0x167   : > { %2597 = vmatprep.mubr.msk.bf16.mxu0 %vm665_vm2, %v564_v57 }
 0x168   : > { %702 = vmatmul.mubr.bf16.vlgmr.msra.gmra.mrb[0].mxu0 %v563_v58 }
 0x169   : > { %2883 = vmatprep.mubr.msk.bf16.mxu0 %vm3308_vm5, %v3307_v32 }
 0x23b   : > { %v703_v61 = vpop.f32.mrb[0].mxu0 }
 0x23c   : > { %v704_v62 = vadd.f32 %v703_v61, %v592_v60  ;;  %v705_v63 = vpop.f32.mrb[1].mxu0 }
 0x23d   : > { %v706_v0 = vpop.f32.mrb[2].mxu0 }
 0x23e   : > { %v707_v1 = vpop.f32.mrb[3].mxu0  ;;  %v709_v2 = vsel %vm474_vm1, %v704_v62, 0.0 }
 0x23f   : > { %710 = vadd.xlane.f32.xlu1 %v709_v2 }
 0x2cc   : > { %v711_v3 = vpop.xlane.xlu1 %710 }
 0x2cd   : > { %v713_v4 = vmul.f32 0.015625, %v711_v3 }
 0x2cf   : > { %v714_v5 = vsub.f32 %v704_v62, %v713_v4 }
 0x2d1   : > { %v715_v7 = vmul.f32 %v714_v5, %v714_v5 }
 0x2d3   : > { %v716_v8 = vsel %vm474_vm1, %v715_v7, 0.0  ;;  %v3310_v7 = vmov 65535  }
 0x2d4   : > { %717 = vadd.xlane.f32.xlu1 %v716_v8  ;;  %v1066_v8 = vsel %vm1064_vm6, 4294967295, %v3310_v7 }
 0x361   : > { %v718_v9 = vpop.xlane.xlu1 %717 }
 0x362   : > { %v719_v10 = vmul.f32 0.015625, %v718_v9 }
 0x364   : > { %v720_v11 = vadd.f32 1e-05, %v719_v10  ;;  %v3612_v10 = vsel %vm1065_vm7, %v1066_v8, 0  ;;  %v3139_v8 = vld [vmem:[%s4044_s8] sm:$0xff]  }
 0x366   : > { %3209 = vrsqrt.f32 %v720_v11 }
 0x370   : > { %v3210_v13 = vpop.eup %3209 }
 0x371   : > { %v722_v16 = vmul.f32 %v3210_v13, %v714_v5 }
 0x373   : > { %v727_v17 = vmul.f32 %v726_v12, %v722_v16 }
 0x375   : > { %v732_v19 = vadd.f32 %v731_v14, %v727_v17 }
 0x377   : > { %v736_v20 = vadd.f32 %v735_v18, %v732_v19 }
 0x379   : > { %737 = vst.msk [vmem:[#allocation2 + $0x1] sm:$0xf] %vm474_vm1, %v736_v20 }
 0x380   : > { %v3538_v21 = vld [vmem:[#allocation2] sm:$0x1f] }
 0x381   : > { %v741_v22 = vsel %vm740_vm4, %v3538_v21, 0.0 }
 0x382   : > { %742 = vadd.xlane.f32.xlu0 %v741_v22 }
 0x40f   : > { %v743_v23 = vpop.xlane.xlu0 %742 }
 0x410   : > { %v744_v24 = vmul.f32 0.015625, %v743_v23 }
 0x412   : > { %v745_v25 = vsub.f32 %v3538_v21, %v744_v24 }
 0x414   : > { %v746_v26 = vmul.f32 %v745_v25, %v745_v25 }
 0x416   : > { %v747_v27 = vsel %vm740_vm4, %v746_v26, 0.0 }
 0x417   : > { %748 = vadd.xlane.f32.xlu1 %v747_v27 }
 0x4a4   : > { %v749_v41 = vpop.xlane.xlu1 %748 }
 0x4a5   : > { %v750_v42 = vmul.f32 0.015625, %v749_v41 }
 0x4a7   : > { %v751_v43 = vadd.f32 1e-05, %v750_v42 }
 0x4a9   : > { %3211 = vrsqrt.f32 %v751_v43 }
 0x4b3   : > { %v3212_v46 = vpop.eup %3211 }
 0x4b4   : > { %v753_v47 = vmul.f32 %v3212_v46, %v745_v25 }
 0x4b6   : > { %v758_v49 = vmul.f32 %v757_v45, %v753_v47 }
 0x4b8   : > { %v763_v50 = vadd.f32 %v762_v48, %v758_v49 }
 0x4ba   : > { %v764_v52 = vpack.c.bf16 %v763_v50, %v763_v50 }
 0x4bc   : > { %2606 = vmatmul.mubr.msk.bf16.vlgmr.msra.gmra.mrb[0].mxu1 %vm665_vm2, %v764_v52 }
 0x4bd   : > { %2858 = vmatpush3.bf16.msra.mxu1 %v3135_v51  ;;  %2865 = vmatprep.mubr.msk.bf16.mxu1 %vm3308_vm5, %v3307_v32 }
 0x4be   : > { %2859 = vmatprep.subr.bf16.mxu1 %v3307_v32 }
 0x4c1   : > { %2860 = vmatpush3.bf16.msra.mxu1 %v3136_v53 }
 0x4c2   : > { %2861 = vmatprep.subr.bf16.mxu1 %v3307_v32 }
 0x4c5   : > { %2862 = vmatpush3.bf16.msra.mxu1 %v3137_v54 }
 0x4c6   : > { %2863 = vmatprep.subr.bf16.mxu1 %v3307_v32 }
 0x4c9   : > { %2864 = vmatpush3.bf16.msra.mxu1 %v3138_v55 }
 0x4ca   : > { %2869 = vmatprep.subr.bf16.mxu1 %v3307_v32 }
 0x4cc   : > { %2866 = vmatmul.mubr.msk.bf16.vlgmr.msra.gmra.mrb[4].mxu1 %vm665_vm2, %v764_v52 }
 0x4cd   : > { %2871 = vmatprep.mubr.msk.bf16.mxu1 %vm3308_vm5, %v3307_v32 }
 0x58f   : > { %v850_v56 = vpop.f32.mrb[0].mxu1 }
 0x590   : > { %v929_v57 = vpack.c.bf16 %v850_v56, %v850_v56  ;;  %v852_v58 = vpop.f32.mrb[1].mxu1 }
 0x591   : > { %v930_v60 = vpack.c.bf16 %v852_v58, %v852_v58  ;;  %v854_v61 = vpop.f32.mrb[2].mxu1 }
 0x592   : > { %993 = vrot.lane.b32.xlu1 %v929_v57, %s4051_s22  ;;  %v855_v62 = vpop.f32.mrb[3].mxu1 }
 0x593   : > { %v935_v63 = vsel %vm665_vm2, %v930_v60, 0  ;;  %996 = vrot.lane.b32.xlu0 %v930_v60, %s4051_s22  ;;  %v1161_v60 = vrot.slane %v3575_v44, %v3500_v37 }
 0x594   : > { %2870 = vmatpush3.bf16.xpose.msra.mxu1 %v935_v63 }
 0x595   : > { %2875 = vmatprep.subr.bf16.mxu1 %v3307_v32 }
 0x59b   : > { %2872 = vmatmul.mubr.msk.bf16.vlgmr.msra.gmra.mrb[8].mxu1 %vm665_vm2, %v929_v57 }
 0x59c   : > { %2877 = vmatprep.mubr.msk.bf16.mxu1 %vm3308_vm5, %v3307_v32 }
 0x59f   : > { %v923_v0 = vpop.f32.mrb[4].mxu1 }
 0x5a0   : > { %v2867_v1 = vpop.f32.mrb[5].mxu1  ;;  %v991_v9 = vpack.c.bf16 %v923_v0, %v923_v0 }
 0x5a1   : > { %v926_v2 = vpop.f32.mrb[6].mxu1 }
 0x5a2   : > { %v2868_v3 = vpop.f32.mrb[7].mxu1  ;;  %v1115_v11 = vand.u32 %v3612_v10, %v991_v9 }
 0x604   : > { %v994_v12 = vpop.permute.xlu1 %993 }
 0x605   : > { %v997_v4 = vpop.permute.xlu0 %996 }
 0x606   : > { %v1002_v5 = vsel %vm665_vm2, %v997_v4, 0 }
 0x607   : > { %2876 = vmatpush3.bf16.xpose.msra.mxu1 %v1002_v5 }
 0x608   : > { %2887 = vmatprep.subr.bf16.mxu1 %v3307_v32 }
 0x60e   : > { %2878 = vmatmul.mubr.msk.bf16.vlgmr.msra.gmra.mrb[12].mxu1 %vm665_vm2, %v994_v12 }
 0x60f   : > { %2888 = vmatpush3.bf16.msra.mxu1 %v1115_v11  ;;  %2889 = vmatprep.mubr.msk.bf16.mxu1 %vm3308_vm5, %v3307_v32  ;;  %v3142_v11 = vld [vmem:[%s4044_s8 + $0x18] sm:$0xff]  }
 0x610   : > { %2893 = vmatprep.subr.bf16.mxu1 %v3307_v32 }
 0x66e   : > { %v971_v13 = vpop.f32.mrb[8].mxu1 }
 0x66f   : > { %v977_v14 = vmul.f32 0.125, %v971_v13  ;;  %v2873_v16 = vpop.f32.mrb[9].mxu1 }
 0x670   : > { %v974_v17 = vpop.f32.mrb[10].mxu1  ;;  %v1183_v16 = vsub.s32 4, %v3464_v15 }
 0x671   : > { %v2874_v18 = vpop.f32.mrb[11].mxu1  ;;  %v979_v19 = vsel %vm978_vm8, %v977_v14, -inf  ;;  %v1179_v17 = vrot.slane %v3575_v44, %v3509_v40 }
 0x672   : > { %980 = vmax.xlane.f32.xlu1 %v979_v19 }
 0x6e1   : > { %v1038_v20 = vpop.f32.mrb[12].mxu1 }
 0x6e2   : > { %v1044_v22 = vmul.f32 0.125, %v1038_v20  ;;  %v2879_v23 = vpop.f32.mrb[13].mxu1  ;;  %v1184_v20 = vrot.slane %v3575_v44, %v1183_v16 }
 0x6e3   : > { %v1041_v24 = vpop.f32.mrb[14].mxu1 }
 0x6e4   : > { %v2880_v25 = vpop.f32.mrb[15].mxu1  ;;  %v1045_v26 = vsel %vm978_vm8, %v1044_v22, -inf }
 0x6e5   : > { %1046 = vmax.xlane.f32.xlu0 %v1045_v26  ;;  %v3143_v25 = vld [vmem:[%s4046_s10] sm:$0xff]   ;;  %v3144_v26 = vld [vmem:[%s4046_s10 + $0x8] sm:$0xff]  }
 0x6ff   : > { %v981_v27 = vpop.xlane.xlu1 %980 }
 0x700   : > { %v982_v28 = vsub.f32 %v977_v14, %v981_v27  ;;  %v3145_v27 = vld [vmem:[%s4046_s10 + $0x10] sm:$0xff]  }
 0x702   : > { %v983_v29 = vmul.f32 1.442695, %v982_v28  ;;  %v3146_v28 = vld [vmem:[%s4046_s10 + $0x18] sm:$0xff]  }
 0x704   : > { %3213 = vpow2.f32 %v983_v29  ;;  %v3147_v29 = vld [vmem:[%s4046_s10 + $0x20] sm:$0xff]  }
 0x70e   : > { %v3214_v30 = vpop.eup %3213 }
 0x70f   : > { %v985_v31 = vsel %vm978_vm8, %v3214_v30, 0.0 }
 0x710   : > { %986 = vadd.xlane.f32.xlu0 %v985_v31  ;;  %v3149_v31 = vld [vmem:[%s4046_s10 + $0x30] sm:$0xff]  }
 0x726   : > { %1058 = vrot.lane.b32.xlu0 %v991_v9, %s4051_s22  ;;  %v3141_v9 = vld [vmem:[%s4044_s8 + $0x10] sm:$0xff]   ;;  %s2512_s22 = scalar_lea.sflag [#allocation4], %s458_s25 }
 0x772   : > { %v1047_v33 = vpop.xlane.xlu0 %1046 }
 0x773   : > { %v1048_v34 = vsub.f32 %v1044_v22, %v1047_v33  ;;  %v3150_v33 = vld [vmem:[%s4046_s10 + $0x38] sm:$0xff]  }
 0x775   : > { %v1049_v35 = vmul.f32 1.442695, %v1048_v34  ;;  %v2616_v34 = vld [vmem:[%s4045_s9] ss:$0 sm:$0xff] }
 0x777   : > { %3215 = vpow2.f32 %v1049_v35 }
 0x781   : > { %v3216_v38 = vpop.eup %3215 }
 0x782   : > { %v1051_v41 = vsel %vm978_vm8, %v3216_v38, 0.0 }
 0x783   : > { %1052 = vadd.xlane.f32.xlu1 %v1051_v41 }
 0x79d   : > { %v987_v42 = vpop.xlane.xlu0 %986 }
 0x79e   : > { %3217 = vrcp.f32 %v987_v42 }
 0x7a1   : > { %v1059_v43 = vpop.permute.xlu0 %1058 }
 0x7a2   : > { %v1069_v45 = vand.u32 %v3612_v10, %v1059_v43 }
 0x7a4   : > { %2882 = vmatpush3.bf16.msra.mxu0 %v1069_v45 }
 0x7a8   : > { %v3218_v46 = vpop.eup %3217 }
 0x7a9   : > { %v989_v47 = vmul.f32 %v3218_v46, %v3214_v30  ;;  %v3148_v30 = vld [vmem:[%s4046_s10 + $0x28] sm:$0xff]  }
 0x7ab   : > { %v990_v48 = vpack.c.bf16 %v989_v47, %v989_v47 }
 0x7ad   : > { %2890 = vmatmul.mubr.msk.bf16.vlgmr.msra.gmra.mrb[16].mxu1 %vm1060_vm9, %v990_v48 }
 0x7ae   : > { %2901 = vmatprep.mubr.msk.bf16.mxu1 %vm3308_vm5, %v3307_v32  ;;  %2894 = vmatpush3.bf16.msra.mxu1 %v3139_v8 }
 0x7af   : > { %2895 = vmatprep.subr.bf16.mxu1 %v3307_v32 }
 0x810   : > { %v1053_v49 = vpop.xlane.xlu1 %1052 }
 0x811   : > { %3219 = vrcp.f32 %v1053_v49 }
 0x81b   : > { %v3220_v50 = vpop.eup %3219 }
 0x81c   : > { %v1055_v51 = vmul.f32 %v3220_v50, %v3216_v38 }
 0x81e   : > { %v1056_v52 = vpack.c.bf16 %v1055_v51, %v1055_v51 }
 0x820   : > { %2884 = vmatmul.mubr.msk.bf16.vlgmr.msra.gmra.mrb[4].mxu0 %vm1060_vm9, %v1056_v52 }
 0x821   : > { %1523 = vmatprep.mubr.bf16.mxu0 %v3305_v6 }
 0x880   : > { %v1151_v53 = vpop.f32.mrb[16].mxu1 }
 0x881   : > { %v2891_v54 = vpop.f32.mrb[17].mxu1 }
 0x882   : > { %v1154_v55 = vpop.f32.mrb[18].mxu1 }
 0x883   : > { %v2892_v56 = vpop.f32.mrb[19].mxu1 }
 0x8f3   : > { %v1105_v57 = vpop.f32.mrb[4].mxu0 }
 0x8f4   : > { %v1152_v58 = vadd.f32 %v1151_v53, %v1105_v57  ;;  %v2885_v61 = vpop.f32.mrb[5].mxu0 }
 0x8f5   : > { %v1108_v62 = vpop.f32.mrb[6].mxu0 }
 0x8f6   : > { %v1157_v63 = vadd.f32 %v1152_v58, %v3538_v21  ;;  %v2886_v0 = vpop.f32.mrb[7].mxu0  ;;  %v3140_v21 = vld [vmem:[%s4044_s8 + $0x8] sm:$0xff]  }
 0x8f7   : > { %2896 = vmatpush3.bf16.msra.mxu1 %v3140_v21 }
 0x8f8   : > { %v3633_v1 = vadd.f32 %v1161_v60, %v1157_v63  ;;  %2897 = vmatprep.subr.bf16.mxu1 %v3307_v32 }
 0x8fa   : > { %v1163_v2 = vsel %vm740_vm4, %v3633_v1, 0.0 }
 0x8fb   : > { %1164 = vadd.xlane.f32.xlu1 %v1163_v2  ;;  %2898 = vmatpush3.bf16.msra.mxu1 %v3141_v9 }
 0x8fc   : > { %2899 = vmatprep.subr.bf16.mxu1 %v3307_v32 }
 0x8ff   : > { %2900 = vmatpush3.bf16.msra.mxu1 %v3142_v11 }
 0x900   : > { %2905 = vmatprep.subr.bf16.mxu1 %v3307_v32 }
 0x988   : > { %v1165_v6 = vpop.xlane.xlu1 %1164 }
 0x989   : > { %v1166_v3 = vmul.f32 0.015625, %v1165_v6 }
 0x98b   : > { %v1167_v4 = vsub.f32 %v3633_v1, %v1166_v3 }
 0x98d   : > { %v1168_v5 = vmul.f32 %v1167_v4, %v1167_v4 }
 0x98f   : > { %v1169_v7 = vsel %vm740_vm4, %v1168_v5, 0.0 }
 0x990   : > { %1170 = vadd.xlane.f32.xlu1 %v1169_v7 }
 0xa1d   : > { %v1171_v12 = vpop.xlane.xlu1 %1170 }
 0xa1e   : > { %v1172_v13 = vmul.f32 0.015625, %v1171_v12 }
 0xa20   : > { %v1173_v14 = vadd.f32 1e-05, %v1172_v13 }
 0xa22   : > { %3221 = vrsqrt.f32 %v1173_v14 }
 0xa2c   : > { %v3222_v18 = vpop.eup %3221 }
 0xa2d   : > { %v1175_v19 = vmul.f32 %v3222_v18, %v1167_v4  ;;  %v1410_v18 = vsub.s32 5, %v3464_v15  ;;  %v3179_v15 = vld [vmem:[%s4047_s11] sm:$0xff]  }
 0xa2f   : > { %v1180_v22 = vmul.f32 %v1179_v17, %v1175_v19  ;;  %v1411_v19 = vrot.slane %v3575_v44, %v1410_v18  ;;  %v3153_v44 = vld [vmem:[%s4042_s6 + $0x44] ss:$8 sps:$4 sm:$0xff]  }
 0xa30   : > { %1491 = vmatprep.subr.bf16.mxu0 %v3153_v44 }
 0xa31   : > { %v1185_v23 = vadd.f32 %v1184_v20, %v1180_v22 }
 0xa33   : > { %v1186_v24 = vpack.c.bf16 %v1185_v23, %v1185_v23 }
 0xa35   : > { %2902 = vmatmul.mubr.msk.bf16.vlgmr.msra.gmra.mrb[20].mxu1 %vm665_vm2, %v1186_v24 }
 0xa36   : > { %2921 = vmatprep.mubr.msk.bf16.mxu1 %vm3308_vm5, %v3307_v32  ;;  %2906 = vmatpush3.bf16.msra.mxu1 %v3143_v25 }
 0xa37   : > { %2907 = vmatprep.subr.bf16.mxu1 %v3307_v32 }
 0xa3a   : > { %2908 = vmatpush3.bf16.msra.mxu1 %v3144_v26 }
 0xa3b   : > { %2909 = vmatprep.subr.bf16.mxu1 %v3307_v32 }
 0xa3e   : > { %2910 = vmatpush3.bf16.msra.mxu1 %v3145_v27 }
 0xa3f   : > { %2911 = vmatprep.subr.bf16.mxu1 %v3307_v32 }
 0xa42   : > { %2912 = vmatpush3.bf16.msra.mxu1 %v3146_v28 }
 0xa43   : > { %2913 = vmatprep.subr.bf16.mxu1 %v3307_v32 }
 0xa46   : > { %2914 = vmatpush3.bf16.msra.mxu1 %v3147_v29 }
 0xa47   : > { %2915 = vmatprep.subr.bf16.mxu1 %v3307_v32 }
 0xa4a   : > { %2916 = vmatpush3.bf16.msra.mxu1 %v3148_v30 }
 0xa4b   : > { %2917 = vmatprep.subr.bf16.mxu1 %v3307_v32 }
 0xa4e   : > { %2918 = vmatpush3.bf16.msra.mxu1 %v3149_v31 }
 0xa4f   : > { %2919 = vmatprep.subr.bf16.mxu1 %v3307_v32 }
 0xa52   : > { %2920 = vmatpush3.bf16.msra.mxu1 %v3150_v33 }
 0xa53   : > { %2937 = vmatprep.subr.bf16.mxu1 %v3307_v32 }
 0xb08   : > { %v1263_v35 = vpop.f32.mrb[20].mxu1 }
 0xb09   : > { %v1264_v38 = vadd.f32 %v2616_v34, %v1263_v35  ;;  %v2903_v41 = vpop.f32.mrb[21].mxu1  ;;  %v3156_v34 = vld [vmem:[%s4042_s6 + $0x54] ss:$8 sps:$4 sm:$0xff]   ;;  %v3154_v35 = vld [vmem:[%s4042_s6 + $0x50] ss:$8 sps:$4 sm:$0xff]  }
 0xb0a   : > { %v1266_v42 = vpop.f32.mrb[22].mxu1  ;;  %v3157_v41 = vld [vmem:[%s4042_s6 + $0x60] ss:$8 sps:$4 sm:$0xff]  }
 0xb0b   : > { %v1270_v43 = vmul.f32 0.70710677, %v1264_v38  ;;  %v2904_v45 = vpop.f32.mrb[23].mxu1  ;;  %v1269_v12 = vmul.f32 0.5, %v1264_v38  ;;  %v3159_v38 = vld [vmem:[%s4042_s6 + $0x64] ss:$8 sps:$4 sm:$0xff]  }
 0xb0c   : > { %v3162_v42 = vld [vmem:[%s4042_s6 + $0x74] ss:$8 sps:$4 sm:$0xff]  }
 0xb0d   : > { %v2622_v46 = vclamps-f32 %v1270_v43, 4.0  ;;  %v3160_v43 = vld [vmem:[%s4042_s6 + $0x70] ss:$8 sps:$4 sm:$0xff]  }
 0xb0f   : > { %v1273_v47 = vmul.f32 %v2622_v46, %v2622_v46 }
 0xb11   : > { %v1274_v48 = vmul.f32 0.0, %v1273_v47 }
 0xb13   : > { %v1275_v49 = vadd.f32 0.00022905065, %v1274_v48  ;;  %v1285_v50 = vadd.f32 -1.1791603e-07, %v1274_v48  ;;  %v3740_v48 = vld [vmem:[%s4041_s5 + $0x8] sm:$0x3f] }
 0xb15   : > { %v1286_v51 = vmul.f32 %v1285_v50, %v1273_v47  ;;  %v1276_v52 = vmul.f32 %v1275_v49, %v1273_v47  ;;  %v1431_v49 = vrot.slane %v3740_v48, %v3497_v36  ;;  %v3165_v36 = vld [vmem:[%s4043_s7 + $0x30] sm:$0xff]  }
 0xb17   : > { %v1287_v53 = vadd.f32 2.3547966e-05, %v1286_v51  ;;  %v1277_v55 = vadd.f32 0.003408291, %v1276_v52  ;;  %v1436_v52 = vrot.slane %v3740_v48, %v3506_v39  ;;  %v3166_v39 = vld [vmem:[%s4043_s7 + $0x38] sm:$0xff]  }
 0xb19   : > { %v1288_v54 = vmul.f32 %v1287_v53, %v1273_v47  ;;  %v1278_v58 = vmul.f32 %v1277_v55, %v1273_v47  ;;  %v3163_v55 = vld [vmem:[%s4043_s7 + $0x20] sm:$0xff]  }
 0xb1b   : > { %v1289_v56 = vadd.f32 0.0010179626, %v1288_v54  ;;  %v1279_v62 = vadd.f32 0.050955694, %v1278_v58 }
 0xb1d   : > { %v1290_v57 = vmul.f32 %v1289_v56, %v1273_v47  ;;  %v1280_v2 = vmul.f32 %v1279_v62, %v1273_v47 }
 0xb1f   : > { %v1291_v60 = vadd.f32 0.01407047, %v1290_v57  ;;  %v1281_v4 = vadd.f32 0.18520832, %v1280_v2  ;;  %v3164_v57 = vld [vmem:[%s4043_s7 + $0x28] sm:$0xff]  }
 0xb21   : > { %v1292_v61 = vmul.f32 %v1291_v60, %v1273_v47  ;;  %v1282_v7 = vmul.f32 %v1281_v4, %v1273_v47 }
 0xb23   : > { %v1293_v63 = vadd.f32 0.11098505, %v1292_v61  ;;  %v1283_v8 = vadd.f32 1.1283791, %v1282_v7 }
 0xb25   : > { %v1294_v0 = vmul.f32 %v1293_v63, %v1273_v47  ;;  %v1284_v21 = vmul.f32 %v2622_v46, %v1283_v8 }
 0xb27   : > { %v1295_v6 = vadd.f32 0.49746925, %v1294_v0 }
 0xb29   : > { %v1296_v3 = vmul.f32 %v1295_v6, %v1273_v47 }
 0xb2b   : > { %v1297_v5 = vadd.f32 1.0, %v1296_v3 }
 0xb2d   : > { %3223 = vrcp.f32 %v1297_v5 }
 0xb37   : > { %v3224_v9 = vpop.eup %3223 }
 0xb38   : > { %v1299_v11 = vmul.f32 %v3224_v9, %v1284_v21 }
 0xb3a   : > { %v1300_v13 = vadd.f32 1.0, %v1299_v11 }
 0xb3c   : > { %v1301_v14 = vmul.f32 %v1300_v13, %v1269_v12 }
 0xb3e   : > { %v1302_v17 = vpack.c.bf16 %v1301_v14, %v1301_v14 }
 0xb40   : > { %2922 = vmatmul.mubr.bf16.vlgmr.msra.gmra.mrb[24].mxu1 %v1302_v17 }
 0xb41   : > { %2939 = vmatprep.mubr.msk.bf16.mxu1 %vm3308_vm5, %v3307_v32 }
 0xc13   : > { %v1401_v20 = vpop.f32.mrb[24].mxu1 }
 0xc14   : > { %v1407_v22 = vadd.f32 %v1401_v20, %v3633_v1  ;;  %v2923_v23 = vpop.f32.mrb[25].mxu1  ;;  %v3151_v1 = vld [vmem:[%s4042_s6 + $0x40] ss:$8 sps:$4 sm:$0xff]  }
 0xc15   : > { %v1404_v24 = vpop.f32.mrb[26].mxu1  ;;  %1492 = vmatpush1.bf16.msra.mxu0 %v3151_v1 }
 0xc16   : > { %v3706_v25 = vadd.f32 %v1411_v19, %v1407_v22  ;;  %v2924_v26 = vpop.f32.mrb[27].mxu1  ;;  %1493 = vmatprep.subr.bf16.mxu0 %v3156_v34 }
 0xc18   : > { %v1415_v27 = vsel %vm740_vm4, %v3706_v25, 0.0 }
 0xc19   : > { %1416 = vadd.xlane.f32.xlu1 %v1415_v27  ;;  %1494 = vmatpush1.bf16.msra.mxu0 %v3154_v35 }
 0xc1a   : > { %1495 = vmatprep.subr.bf16.mxu0 %v3159_v38 }
 0xc1d   : > { %1496 = vmatpush1.bf16.msra.mxu0 %v3157_v41 }
 0xc1e   : > { %1497 = vmatprep.subr.bf16.mxu0 %v3162_v42 }
 0xc21   : > { %1498 = vmatpush1.bf16.msra.mxu0 %v3160_v43 }
 0xc22   : > { %2925 = vmatprep.subr.bf16.mxu0 %v3307_v32 }
 0xca6   : > { %v1417_v28 = vpop.xlane.xlu1 %1416 }
 0xca7   : > { %v1418_v29 = vmul.f32 0.015625, %v1417_v28 }
 0xca9   : > { %v1419_v30 = vsub.f32 %v3706_v25, %v1418_v29 }
 0xcab   : > { %v1420_v31 = vmul.f32 %v1419_v30, %v1419_v30 }
 0xcad   : > { %v1421_v33 = vsel %vm740_vm4, %v1420_v31, 0.0 }
 0xcae   : > { %1422 = vadd.xlane.f32.xlu1 %v1421_v33 }
 0xd3b   : > { %v1423_v45 = vpop.xlane.xlu1 %1422 }
 0xd3c   : > { %v1424_v46 = vmul.f32 0.015625, %v1423_v45 }
 0xd3e   : > { %v1425_v47 = vadd.f32 1e-05, %v1424_v46 }
 0xd40   : > { %3225 = vrsqrt.f32 %v1425_v47 }
 0xd4a   : > { %v3226_v50 = vpop.eup %3225 }
 0xd4b   : > { %v1427_v51 = vmul.f32 %v3226_v50, %v1419_v30 }
 0xd4d   : > { %v1432_v53 = vmul.f32 %v1431_v49, %v1427_v51 }
 0xd4f   : > { %v1437_v54 = vadd.f32 %v1436_v52, %v1432_v53 }
 0xd51   : > { %v1438_v56 = vpack.c.bf16 %v1437_v54, %v1437_v54 }
 0xd53   : > { %2648 = vmatmul.mubr.msk.bf16.vlgmr.msra.gmra.mrb[8].mxu0 %vm665_vm2, %v1438_v56 }
 0xd54   : > { %2926 = vmatpush3.bf16.msra.mxu0 %v3163_v55  ;;  %2933 = vmatprep.mubr.msk.bf16.mxu0 %vm3308_vm5, %v3307_v32 }
 0xd55   : > { %2927 = vmatprep.subr.bf16.mxu0 %v3307_v32 }
 0xd58   : > { %2928 = vmatpush3.bf16.msra.mxu0 %v3164_v57 }
 0xd59   : > { %2929 = vmatprep.subr.bf16.mxu0 %v3307_v32 }
 0xd5c   : > { %2930 = vmatpush3.bf16.msra.mxu0 %v3165_v36 }
 0xd5d   : > { %2931 = vmatprep.subr.bf16.mxu0 %v3307_v32 }
 0xd60   : > { %2932 = vmatpush3.bf16.msra.mxu0 %v3166_v39 }
 0xd61   : > { %2949 = vmatprep.subr.bf16.mxu0 %v3307_v32 }
 0xd63   : > { %2934 = vmatmul.mubr.msk.bf16.vlgmr.msra.gmra.mrb[12].mxu0 %vm665_vm2, %v1438_v56 }
 0xd64   : > { %2951 = vmatprep.mubr.msk.bf16.mxu0 %vm3308_vm5, %v3307_v32 }
 0xe26   : > { %v1525_v58 = vpop.f32.mrb[8].mxu0 }
 0xe27   : > { %v1605_v60 = vpack.c.bf16 %v1525_v58, %v1525_v58  ;;  %v1527_v61 = vpop.f32.mrb[9].mxu0 }
 0xe28   : > { %v1606_v62 = vpack.c.bf16 %v1527_v61, %v1527_v61  ;;  %v1529_v63 = vpop.f32.mrb[10].mxu0 }
 0xe29   : > { %1668 = vrot.lane.b32.xlu0 %v1605_v60, %s4060_s0  ;;  %v1530_v0 = vpop.f32.mrb[11].mxu0 }
 0xe2a   : > { %v1611_v2 = vsel %vm665_vm2, %v1606_v62, 0  ;;  %1671 = vrot.lane.b32.xlu1 %v1606_v62, %s4060_s0 }
 0xe2b   : > { %2938 = vmatpush3.bf16.xpose.msra.mxu1 %v1611_v2 }
 0xe2c   : > { %2943 = vmatprep.subr.bf16.mxu1 %v3307_v32 }
 0xe32   : > { %2940 = vmatmul.mubr.msk.bf16.vlgmr.msra.gmra.mrb[28].mxu1 %vm665_vm2, %v1605_v60 }
 0xe33   : > { %2945 = vmatprep.mubr.msk.bf16.mxu1 %vm3308_vm5, %v3307_v32 }
 0xe36   : > { %v1599_v6 = vpop.f32.mrb[12].mxu0 }
 0xe37   : > { %v2935_v3 = vpop.f32.mrb[13].mxu0  ;;  %v1666_v21 = vpack.c.bf16 %v1599_v6, %v1599_v6 }
 0xe38   : > { %v1602_v4 = vpop.f32.mrb[14].mxu0 }
 0xe39   : > { %v2936_v5 = vpop.f32.mrb[15].mxu0  ;;  %v1785_v9 = vand.u32 %v1666_v21, %v3612_v10 }
 0xe9b   : > { %v1669_v11 = vpop.permute.xlu0 %1668 }
 0xe9c   : > { %v1672_v7 = vpop.permute.xlu1 %1671 }
 0xe9d   : > { %v1677_v8 = vsel %vm665_vm2, %v1672_v7, 0  ;;  %v3169_v7 = vld [vmem:[%s4044_s8 + $0x30] sm:$0xff]  }
 0xe9e   : > { %2944 = vmatpush3.bf16.xpose.msra.mxu1 %v1677_v8  ;;  %v3170_v8 = vld [vmem:[%s4044_s8 + $0x38] sm:$0xff]  }
 0xe9f   : > { %2955 = vmatprep.subr.bf16.mxu1 %v3307_v32 }
 0xea5   : > { %2946 = vmatmul.mubr.msk.bf16.vlgmr.msra.gmra.mrb[32].mxu1 %vm665_vm2, %v1669_v11 }
 0xea6   : > { %2956 = vmatpush3.bf16.msra.mxu1 %v1785_v9  ;;  %2957 = vmatprep.mubr.msk.bf16.mxu1 %vm3308_vm5, %v3307_v32 }
 0xea7   : > { %2973 = vmatprep.subr.bf16.mxu1 %v3307_v32 }
 0xf05   : > { %v1647_v12 = vpop.f32.mrb[28].mxu1 }
 0xf06   : > { %v1653_v13 = vmul.f32 0.125, %v1647_v12  ;;  %v2941_v14 = vpop.f32.mrb[29].mxu1  ;;  %v1849_v12 = vrot.slane %v3740_v48, %v3509_v40  ;;  %v3172_v40 = vld [vmem:[%s4046_s10 + $0x48] sm:$0xff]  }
 0xf07   : > { %v1650_v17 = vpop.f32.mrb[30].mxu1 }
 0xf08   : > { %v2942_v19 = vpop.f32.mrb[31].mxu1  ;;  %v1654_v20 = vsel %vm978_vm8, %v1653_v13, -inf  ;;  %v1854_v17 = vrot.slane %v3740_v48, %v1183_v16  ;;  %v3173_v16 = vld [vmem:[%s4046_s10 + $0x50] sm:$0xff]  }
 0xf09   : > { %1655 = vmax.xlane.f32.xlu0 %v1654_v20 }
 0xf78   : > { %v1713_v22 = vpop.f32.mrb[32].mxu1 }
 0xf79   : > { %v1719_v23 = vmul.f32 0.125, %v1713_v22  ;;  %v2947_v24 = vpop.f32.mrb[33].mxu1 }
 0xf7a   : > { %v1716_v26 = vpop.f32.mrb[34].mxu1  ;;  %v3174_v24 = vld [vmem:[%s4046_s10 + $0x58] sm:$0xff]  }
 0xf7b   : > { %v2948_v27 = vpop.f32.mrb[35].mxu1  ;;  %v1720_v28 = vsel %vm978_vm8, %v1719_v23, -inf  ;;  %v3175_v26 = vld [vmem:[%s4046_s10 + $0x60] sm:$0xff]  }
 0xf7c   : > { %1721 = vmax.xlane.f32.xlu1 %v1720_v28  ;;  %v3176_v27 = vld [vmem:[%s4046_s10 + $0x68] sm:$0xff]   ;;  %v3177_v28 = vld [vmem:[%s4046_s10 + $0x70] sm:$0xff]  }
 0xf96   : > { %v1656_v29 = vpop.xlane.xlu0 %1655 }
 0xf97   : > { %v1657_v30 = vsub.f32 %v1653_v13, %v1656_v29  ;;  %v3178_v29 = vld [vmem:[%s4046_s10 + $0x78] sm:$0xff]  }
 0xf99   : > { %v1658_v31 = vmul.f32 1.442695, %v1657_v30  ;;  %v2675_v30 = vld [vmem:[%s4045_s9 + $0x1] ss:$0 sm:$0xff] }
 0xf9b   : > { %3227 = vpow2.f32 %v1658_v31 }
 0xfa5   : > { %v3228_v33 = vpop.eup %3227 }
 0xfa6   : > { %v1660_v44 = vsel %vm978_vm8, %v3228_v33, 0.0 }
 0xfa7   : > { %1661 = vadd.xlane.f32.xlu0 %v1660_v44 }
0x1009   : > { %v1722_v1 = vpop.xlane.xlu1 %1721 }
0x100a   : > { %v1723_v34 = vsub.f32 %v1719_v23, %v1722_v1  ;;  %v3171_v23 = vld [vmem:[%s4046_s10 + $0x40] sm:$0xff]  }
0x100c   : > { %v1724_v35 = vmul.f32 1.442695, %v1723_v34 }
0x100e   : > { %3229 = vpow2.f32 %v1724_v35 }
0x1018   : > { %v3230_v38 = vpop.eup %3229 }
0x1019   : > { %v1726_v41 = vsel %vm978_vm8, %v3230_v38, 0.0 }
0x101a   : > { %1727 = vadd.xlane.f32.xlu0 %v1726_v41 }
0x1030   : > { %1733 = vrot.lane.b32.xlu0 %v1666_v21, %s4060_s0 }
0x1034   : > { %v1662_v42 = vpop.xlane.xlu0 %1661 }
0x1035   : > { %3231 = vrcp.f32 %v1662_v42 }
0x103f   : > { %v3232_v43 = vpop.eup %3231 }
0x1040   : > { %v1664_v45 = vmul.f32 %v3232_v43, %v3228_v33 }
0x1042   : > { %v1665_v46 = vpack.c.bf16 %v1664_v45, %v1664_v45 }
0x1044   : > { %2958 = vmatmul.mubr.msk.bf16.vlgmr.msra.gmra.mrb[36].mxu1 %vm1060_vm9, %v1665_v46 }
0x1045   : > { %2989 = vmatprep.mubr.msk.bf16.mxu1 %vm3308_vm5, %v3307_v32  ;;  %2974 = vmatpush3.bf16.msra.mxu1 %v3171_v23 }
0x1046   : > { %2975 = vmatprep.subr.bf16.mxu1 %v3307_v32 }
0x1049   : > { %2976 = vmatpush3.bf16.msra.mxu1 %v3172_v40 }
0x104a   : > { %2977 = vmatprep.subr.bf16.mxu1 %v3307_v32 }
0x104d   : > { %2978 = vmatpush3.bf16.msra.mxu1 %v3173_v16 }
0x104e   : > { %2979 = vmatprep.subr.bf16.mxu1 %v3307_v32 }
0x1051   : > { %2980 = vmatpush3.bf16.msra.mxu1 %v3174_v24 }
0x1052   : > { %2981 = vmatprep.subr.bf16.mxu1 %v3307_v32 }
0x1055   : > { %2982 = vmatpush3.bf16.msra.mxu1 %v3175_v26 }
0x1056   : > { %2983 = vmatprep.subr.bf16.mxu1 %v3307_v32 }
0x1059   : > { %2984 = vmatpush3.bf16.msra.mxu1 %v3176_v27  ;;  %v2101_v27 = vrot.slane %v3523_v59, 4 }
0x105a   : > { %2985 = vmatprep.subr.bf16.mxu1 %v3307_v32 }
0x105d   : > { %2986 = vmatpush3.bf16.msra.mxu1 %v3177_v28 }
0x105e   : > { %2987 = vmatprep.subr.bf16.mxu1 %v3307_v32 }
0x1061   : > { %2988 = vmatpush3.bf16.msra.mxu1 %v3178_v29 }
0x1062   : > { %3025 = vmatprep.subr.bf16.mxu1 %v3307_v32 }
0x10a7   : > { %v1728_v47 = vpop.xlane.xlu0 %1727 }
0x10a8   : > { %3233 = vrcp.f32 %v1728_v47 }
0x10ab   : > { %v1734_v49 = vpop.permute.xlu0 %1733 }
0x10ac   : > { %v1739_v50 = vand.u32 %v1734_v49, %v3612_v10  ;;  %v1831_v10 = vrot.slane %v3740_v48, %v3500_v37  ;;  %v3167_v37 = vld [vmem:[%s4044_s8 + $0x20] sm:$0xff]  }
0x10ae   : > { %2950 = vmatpush3.bf16.msra.mxu0 %v1739_v50 }
0x10af   : > { %2961 = vmatprep.subr.bf16.mxu0 %v3307_v32 }
0x10b2   : > { %v3234_v51 = vpop.eup %3233 }
0x10b3   : > { %v1730_v52 = vmul.f32 %v3234_v51, %v3230_v38 }
0x10b5   : > { %v1731_v53 = vpack.c.bf16 %v1730_v52, %v1730_v52 }
0x10b7   : > { %2952 = vmatmul.mubr.msk.bf16.vlgmr.msra.gmra.mrb[16].mxu0 %vm1060_vm9, %v1731_v53 }
0x10b8   : > { %2969 = vmatprep.mubr.msk.bf16.mxu0 %vm3308_vm5, %v3307_v32  ;;  %2962 = vmatpush3.bf16.msra.mxu0 %v3167_v37 }
0x10b9   : > { %2963 = vmatprep.subr.bf16.mxu0 %v3307_v32 }
0x1117   : > { %v1821_v54 = vpop.f32.mrb[36].mxu1 }
0x1118   : > { %v2959_v55 = vpop.f32.mrb[37].mxu1 }
0x1119   : > { %v1824_v56 = vpop.f32.mrb[38].mxu1 }
0x111a   : > { %v2960_v57 = vpop.f32.mrb[39].mxu1 }
0x118a   : > { %v1775_v36 = vpop.f32.mrb[16].mxu0 }
0x118b   : > { %v1822_v39 = vadd.f32 %v1821_v54, %v1775_v36  ;;  %v2953_v58 = vpop.f32.mrb[17].mxu0 }
0x118c   : > { %v1778_v60 = vpop.f32.mrb[18].mxu0 }
0x118d   : > { %v1827_v61 = vadd.f32 %v1822_v39, %v3706_v25  ;;  %v2954_v62 = vpop.f32.mrb[19].mxu0  ;;  %v3168_v25 = vld [vmem:[%s4044_s8 + $0x28] sm:$0xff]  }
0x118e   : > { %2964 = vmatpush3.bf16.msra.mxu0 %v3168_v25 }
0x118f   : > { %v3798_v63 = vadd.f32 %v1831_v10, %v1827_v61  ;;  %2965 = vmatprep.subr.bf16.mxu0 %v3307_v32 }
0x1191   : > { %v1833_v0 = vsel %vm740_vm4, %v3798_v63, 0.0 }
0x1192   : > { %1834 = vadd.xlane.f32.xlu1 %v1833_v0  ;;  %2966 = vmatpush3.bf16.msra.mxu0 %v3169_v7 }
0x1193   : > { %2967 = vmatprep.subr.bf16.mxu0 %v3307_v32 }
0x1196   : > { %2968 = vmatpush3.bf16.msra.mxu0 %v3170_v8  ;;  %v2084_v8 = vrot.slane %v3740_v48, %v1410_v18  ;;  %v3180_v18 = vld [vmem:[%s4047_s11 + $0x8] sm:$0xff]   ;;  %v3181_v48 = vld [vmem:[%s4047_s11 + $0x10] sm:$0xff]  }
0x1197   : > { %2993 = vmatprep.subr.bf16.mxu0 %v3307_v32 }
0x121f   : > { %v1835_v2 = vpop.xlane.xlu1 %1834 }
0x1220   : > { %v1836_v6 = vmul.f32 0.015625, %v1835_v2 }
0x1222   : > { %v1837_v3 = vsub.f32 %v3798_v63, %v1836_v6 }
0x1224   : > { %v1838_v4 = vmul.f32 %v1837_v3, %v1837_v3 }
0x1226   : > { %v1839_v5 = vsel %vm740_vm4, %v1838_v4, 0.0 }
0x1227   : > { %1840 = vadd.xlane.f32.xlu1 %v1839_v5 }
0x12b4   : > { %v1841_v21 = vpop.xlane.xlu1 %1840 }
0x12b5   : > { %v1842_v9 = vmul.f32 0.015625, %v1841_v21 }
0x12b7   : > { %v1843_v11 = vadd.f32 1e-05, %v1842_v9 }
0x12b9   : > { %3235 = vrsqrt.f32 %v1843_v11 }
0x12c3   : > { %v3236_v13 = vpop.eup %3235 }
0x12c4   : > { %v1845_v14 = vmul.f32 %v3236_v13, %v1837_v3 }
0x12c6   : > { %v1850_v19 = vmul.f32 %v1849_v12, %v1845_v14 }
0x12c8   : > { %v1855_v20 = vadd.f32 %v1854_v17, %v1850_v19 }
0x12ca   : > { %v1856_v22 = vpack.c.bf16 %v1855_v20, %v1855_v20 }
0x12cc   : > { %2970 = vmatmul.mubr.msk.bf16.vlgmr.msra.gmra.mrb[20].mxu0 %vm665_vm2, %v1856_v22 }
0x12cd   : > { %3001 = vmatprep.mubr.msk.bf16.mxu0 %vm3308_vm5, %v3307_v32  ;;  %2994 = vmatpush3.bf16.msra.mxu0 %v3179_v15 }
0x12ce   : > { %2995 = vmatprep.subr.bf16.mxu0 %v3307_v32 }
0x12d1   : > { %2996 = vmatpush3.bf16.msra.mxu0 %v3180_v18 }
0x12d2   : > { %2997 = vmatprep.subr.bf16.mxu0 %v3307_v32 }
0x12d5   : > { %2998 = vmatpush3.bf16.msra.mxu0 %v3181_v48 }
0x12d6   : > { %2999 = vmatprep.subr.bf16.mxu0 %v3307_v32 }
0x139f   : > { %v1935_v31 = vpop.f32.mrb[20].mxu0 }
0x13a0   : > { %v1936_v33 = vadd.f32 %v2675_v30, %v1935_v31  ;;  %v2971_v44 = vpop.f32.mrb[21].mxu0  ;;  %v2104_v30 = vrot.slane %v3523_v59, 5  ;;  %v3185_v59 = vld [vmem:[%s4048_s12 + $0x10] sm:$0xff]  }
0x13a1   : > { %v1938_v1 = vpop.f32.mrb[22].mxu0  ;;  %v3183_v44 = vld [vmem:[%s4048_s12] sm:$0xff]  }
0x13a2   : > { %v1942_v34 = vmul.f32 0.70710677, %v1936_v33  ;;  %v2972_v35 = vpop.f32.mrb[23].mxu0  ;;  %v1941_v5 = vmul.f32 0.5, %v1936_v33 }
0x13a3   : > { %v3186_v35 = vld [vmem:[%s4048_s12 + $0x18] sm:$0xff]  }
0x13a4   : > { %v2681_v38 = vclamps-f32 %v1942_v34, 4.0  ;;  %v3184_v34 = vld [vmem:[%s4048_s12 + $0x8] sm:$0xff]  }
0x13a6   : > { %v1945_v41 = vmul.f32 %v2681_v38, %v2681_v38 }
0x13a8   : > { %v1946_v42 = vmul.f32 0.0, %v1945_v41 }
0x13aa   : > { %v1947_v43 = vadd.f32 0.00022905065, %v1946_v42  ;;  %v1957_v45 = vadd.f32 -1.1791603e-07, %v1946_v42  ;;  %v3189_v42 = vld [vmem:[%s4048_s12 + $0x30] sm:$0xff]  }
0x13ac   : > { %v1958_v46 = vmul.f32 %v1957_v45, %v1945_v41  ;;  %v1948_v47 = vmul.f32 %v1947_v43, %v1945_v41  ;;  %v3190_v43 = vld [vmem:[%s4048_s12 + $0x38] sm:$0xff]   ;;  %v3191_v45 = vld [vmem:[%s4048_s12 + $0x40] sm:$0xff]  }
0x13ae   : > { %v1959_v49 = vadd.f32 2.3547966e-05, %v1958_v46  ;;  %v1949_v51 = vadd.f32 0.003408291, %v1948_v47  ;;  %v3192_v46 = vld [vmem:[%s4048_s12 + $0x48] sm:$0xff]   ;;  %v3193_v47 = vld [vmem:[%s4048_s12 + $0x50] sm:$0xff]  }
0x13b0   : > { %v1960_v50 = vmul.f32 %v1959_v49, %v1945_v41  ;;  %v1950_v54 = vmul.f32 %v1949_v51, %v1945_v41  ;;  %v3194_v49 = vld [vmem:[%s4048_s12 + $0x58] sm:$0xff]   ;;  %v3196_v51 = vld [vmem:[%s4048_s12 + $0x68] sm:$0xff]  }
0x13b2   : > { %v1961_v52 = vadd.f32 0.0010179626, %v1960_v50  ;;  %v1951_v57 = vadd.f32 0.050955694, %v1950_v54  ;;  %v3195_v50 = vld [vmem:[%s4048_s12 + $0x60] sm:$0xff]  }
0x13b4   : > { %v1962_v53 = vmul.f32 %v1961_v52, %v1945_v41  ;;  %v1952_v10 = vmul.f32 %v1951_v57, %v1945_v41  ;;  %v2108_v52 = vld [vmem:[%s4049_s13] sm:$0xf] }
0x13b6   : > { %v1963_v55 = vadd.f32 0.01407047, %v1962_v53  ;;  %v1953_v61 = vadd.f32 0.18520832, %v1952_v10  ;;  %v3198_v10 = vld [vmem:[%s4048_s12 + $0x78] sm:$0xff]  }
0x13b8   : > { %v1964_v56 = vmul.f32 %v1963_v55, %v1945_v41  ;;  %v1954_v0 = vmul.f32 %v1953_v61, %v1945_v41  ;;  %v3201_v61 = vld [vmem:[%s4048_s12 + $0x90] sm:$0xff]  }
0x13ba   : > { %v1965_v36 = vadd.f32 0.11098505, %v1964_v56  ;;  %v1955_v2 = vadd.f32 1.1283791, %v1954_v0  ;;  %v3203_v0 = vld [vmem:[%s4048_s12 + $0xa0] sm:$0xff]  }
0x13bc   : > { %v1966_v39 = vmul.f32 %v1965_v36, %v1945_v41  ;;  %v1956_v6 = vmul.f32 %v2681_v38, %v1955_v2  ;;  %v3187_v38 = vld [vmem:[%s4048_s12 + $0x20] sm:$0xff]   ;;  %v3204_v2 = vld [vmem:[%s4048_s12 + $0xa8] sm:$0xff]  }
0x13be   : > { %v1967_v58 = vadd.f32 0.49746925, %v1966_v39  ;;  %v3197_v39 = vld [vmem:[%s4048_s12 + $0x70] sm:$0xff]  }
0x13c0   : > { %v1968_v60 = vmul.f32 %v1967_v58, %v1945_v41  ;;  %v3188_v41 = vld [vmem:[%s4048_s12 + $0x28] sm:$0xff]   ;;  %v3199_v58 = vld [vmem:[%s4048_s12 + $0x80] sm:$0xff]  }
0x13c2   : > { %v1969_v62 = vadd.f32 1.0, %v1968_v60  ;;  %v3200_v60 = vld [vmem:[%s4048_s12 + $0x88] sm:$0xff]  }
0x13c4   : > { %3237 = vrcp.f32 %v1969_v62  ;;  %v3202_v62 = vld [vmem:[%s4048_s12 + $0x98] sm:$0xff]  }
0x13ce   : > { %v3238_v3 = vpop.eup %3237 }
0x13cf   : > { %v1971_v4 = vmul.f32 %v3238_v3, %v1956_v6  ;;  %v2250_v6 = vrot.slane %v2108_v52, 1 }
0x13d1   : > { %v1972_v37 = vadd.f32 1.0, %v1971_v4 }
0x13d3   : > { %v1973_v25 = vmul.f32 %v1972_v37, %v1941_v5 }
0x13d5   : > { %v1974_v7 = vpack.c.bf16 %v1973_v25, %v1973_v25 }
0x13d7   : > { %2990 = vmatmul.mubr.bf16.vlgmr.msra.gmra.mrb[40].mxu1 %v1974_v7 }
0x13d8   : > { %3041 = vmatprep.mubr.msk.bf16.mxu1 %vm3308_vm5, %v3307_v32  ;;  %3026 = vmatpush3.bf16.msra.mxu1 %v3191_v45 }
0x13d9   : > { %3027 = vmatprep.subr.bf16.mxu1 %v3307_v32 }
0x13dc   : > { %3028 = vmatpush3.bf16.msra.mxu1 %v3192_v46 }
0x13dd   : > { %3029 = vmatprep.subr.bf16.mxu1 %v3307_v32 }
0x13e0   : > { %3030 = vmatpush3.bf16.msra.mxu1 %v3193_v47 }
0x13e1   : > { %3031 = vmatprep.subr.bf16.mxu1 %v3307_v32 }
0x13e4   : > { %3032 = vmatpush3.bf16.msra.mxu1 %v3194_v49 }
0x13e5   : > { %3033 = vmatprep.subr.bf16.mxu1 %v3307_v32 }
0x13e8   : > { %3034 = vmatpush3.bf16.msra.mxu1 %v3195_v50 }
0x13e9   : > { %3035 = vmatprep.subr.bf16.mxu1 %v3307_v32 }
0x13ec   : > { %3036 = vmatpush3.bf16.msra.mxu1 %v3196_v51 }
0x13ed   : > { %3037 = vmatprep.subr.bf16.mxu1 %v3307_v32 }
0x13f0   : > { %3038 = vmatpush3.bf16.msra.mxu1 %v3197_v39 }
0x13f1   : > { %3039 = vmatprep.subr.bf16.mxu1 %v3307_v32 }
0x13f4   : > { %3040 = vmatpush3.bf16.msra.mxu1 %v3198_v10 }
0x14aa   : > { %v2074_v21 = vpop.f32.mrb[40].mxu1 }
0x14ab   : > { %v2080_v9 = vadd.f32 %v2074_v21, %v3798_v63  ;;  %v2991_v11 = vpop.f32.mrb[41].mxu1  ;;  %v3182_v63 = vld [vmem:[%s4047_s11 + $0x18] sm:$0xff]   ;;  %v3205_v21 = vld [vmem:[%s4048_s12 + $0xb0] sm:$0xff]  }
0x14ac   : > { %v2077_v12 = vpop.f32.mrb[42].mxu1  ;;  %3000 = vmatpush3.bf16.msra.mxu0 %v3182_v63  ;;  %v2359_v11 = vrot.slane %v2108_v52, 2 }
0x14ad   : > { %v2992_v13 = vpop.f32.mrb[43].mxu1  ;;  %v2085_v14 = vadd.f32 %v2084_v8, %v2080_v9  ;;  %3005 = vmatprep.subr.bf16.mxu0 %v3307_v32  ;;  %v3206_v9 = vld [vmem:[%s4048_s12 + $0xb8] sm:$0xff]  }
0x14af   : > { %v2087_v17 = vsel %vm2086_vm10, %v2085_v14, 0.0 }
0x14b0   : > { %2088 = vadd.xlane.f32.xlu1 %v2087_v17 }
0x153d   : > { %v2089_v19 = vpop.xlane.xlu1 %2088 }
0x153e   : > { %v2090_v20 = vmul.f32 0.015625, %v2089_v19 }
0x1540   : > { %v2091_v22 = vsub.f32 %v2085_v14, %v2090_v20 }
0x1542   : > { %v2092_v23 = vmul.f32 %v2091_v22, %v2091_v22 }
0x1544   : > { %v2093_v40 = vsel %vm2086_vm10, %v2092_v23, 0.0  ;;  %v2468_v23 = vrot.slane %v2108_v52, 3 }
0x1545   : > { %2094 = vadd.xlane.f32.xlu1 %v2093_v40 }
0x15d2   : > { %v2095_v16 = vpop.xlane.xlu1 %2094 }
0x15d3   : > { %v2096_v24 = vmul.f32 0.015625, %v2095_v16 }
0x15d5   : > { %v2097_v26 = vadd.f32 1e-05, %v2096_v24 }
0x15d7   : > { %3239 = vrsqrt.f32 %v2097_v26 }
0x15e1   : > { %v3240_v28 = vpop.eup %3239 }
0x15e2   : > { %v2099_v29 = vmul.f32 %v3240_v28, %v2091_v22 }
0x15e4   : > { %v2103_v31 = vmul.f32 %v2101_v27, %v2099_v29 }
0x15e6   : > { %v2106_v33 = vadd.f32 %v2104_v30, %v2103_v31 }
0x15e8   : > { %v2107_v1 = vpack.c.bf16 %v2106_v33, %v2106_v33 }
0x15ea   : > { %3002 = vmatmul.mubr.msk.bf16.vlgmr.msra.gmra.mrb[24].mxu0 %vm665_vm2, %v2107_v1 }
0x15eb   : > { %3006 = vmatpush3.bf16.msra.mxu0 %v3183_v44  ;;  %3021 = vmatprep.mubr.msk.bf16.mxu0 %vm3308_vm5, %v3307_v32 }
0x15ec   : > { %3007 = vmatprep.subr.bf16.mxu0 %v3307_v32 }
0x15ef   : > { %3008 = vmatpush3.bf16.msra.mxu0 %v3184_v34 }
0x15f0   : > { %3009 = vmatprep.subr.bf16.mxu0 %v3307_v32 }
0x15f3   : > { %3010 = vmatpush3.bf16.msra.mxu0 %v3185_v59 }
0x15f4   : > { %3011 = vmatprep.subr.bf16.mxu0 %v3307_v32 }
0x15f7   : > { %3012 = vmatpush3.bf16.msra.mxu0 %v3186_v35 }
0x15f8   : > { %3013 = vmatprep.subr.bf16.mxu0 %v3307_v32 }
0x15fb   : > { %3014 = vmatpush3.bf16.msra.mxu0 %v3187_v38 }
0x15fc   : > { %3015 = vmatprep.subr.bf16.mxu0 %v3307_v32 }
0x15ff   : > { %3016 = vmatpush3.bf16.msra.mxu0 %v3188_v41 }
0x1600   : > { %3017 = vmatprep.subr.bf16.mxu0 %v3307_v32 }
0x1603   : > { %3018 = vmatpush3.bf16.msra.mxu0 %v3189_v42 }
0x1604   : > { %3019 = vmatprep.subr.bf16.mxu0 %v3307_v32 }
0x1607   : > { %3020 = vmatpush3.bf16.msra.mxu0 %v3190_v43 }
0x1608   : > { %3045 = vmatprep.subr.bf16.mxu0 %v3307_v32 }
0x16bd   : > { %v2178_v53 = vpop.f32.mrb[24].mxu0 }
0x16be   : > { %v2179_v54 = vadd.f32 %v2178_v53, %v2108_v52  ;;  %v3003_v55 = vpop.f32.mrb[25].mxu0 }
0x16bf   : > { %v2181_v56 = vpop.f32.mrb[26].mxu0 }
0x16c0   : > { %v2184_v57 = vpack.c.bf16 %v2179_v54, %v2179_v54  ;;  %v3004_v36 = vpop.f32.mrb[27].mxu0 }
0x16c2   : > { %3022 = vmatmul.mubr.bf16.vlgmr.msra.gmra.mrb[28].mxu0 %v2184_v57 }
0x16c3   : > { %3061 = vmatprep.mubr.msk.bf16.mxu0 %vm3308_vm5, %v3307_v32  ;;  %3046 = vmatpush3.bf16.msra.mxu0 %v3199_v58 }
0x16c4   : > { %3047 = vmatprep.subr.bf16.mxu0 %v3307_v32 }
0x16c7   : > { %3048 = vmatpush3.bf16.msra.mxu0 %v3200_v60 }
0x16c8   : > { %3049 = vmatprep.subr.bf16.mxu0 %v3307_v32 }
0x16cb   : > { %3050 = vmatpush3.bf16.msra.mxu0 %v3201_v61 }
0x16cc   : > { %3051 = vmatprep.subr.bf16.mxu0 %v3307_v32 }
0x16cf   : > { %3052 = vmatpush3.bf16.msra.mxu0 %v3202_v62 }
0x16d0   : > { %3053 = vmatprep.subr.bf16.mxu0 %v3307_v32 }
0x16d3   : > { %3054 = vmatpush3.bf16.msra.mxu0 %v3203_v0 }
0x16d4   : > { %3055 = vmatprep.subr.bf16.mxu0 %v3307_v32 }
0x16d7   : > { %3056 = vmatpush3.bf16.msra.mxu0 %v3204_v2 }
0x16d8   : > { %3057 = vmatprep.subr.bf16.mxu0 %v3307_v32 }
0x16db   : > { %3058 = vmatpush3.bf16.msra.mxu0 %v3205_v21 }
0x16dc   : > { %3059 = vmatprep.subr.bf16.mxu0 %v3307_v32 }
0x16df   : > { %3060 = vmatpush3.bf16.msra.mxu0 %v3206_v9 }
0x1795   : > { %v2286_v3 = vpop.f32.mrb[28].mxu0 }
0x1796   : > { %v2287_v4 = vadd.f32 %v2286_v3, %v2250_v6  ;;  %v3023_v5 = vpop.f32.mrb[29].mxu0 }
0x1797   : > { %v2289_v37 = vpop.f32.mrb[30].mxu0 }
0x1798   : > { %v2292_v25 = vmax.f32 %v2287_v4, 0.0  ;;  %v3024_v7 = vpop.f32.mrb[31].mxu0 }
0x179a   : > { %v2293_v8 = vpack.c.bf16 %v2292_v25, %v2292_v25 }
0x179c   : > { %3042 = vmatmul.mubr.bf16.vlgmr.msra.gmra.mrb[44].mxu1 %v2293_v8 }
0x186f   : > { %v2395_v12 = vpop.f32.mrb[44].mxu1 }
0x1870   : > { %v2396_v13 = vadd.f32 %v2395_v12, %v2359_v11  ;;  %v3043_v14 = vpop.f32.mrb[45].mxu1 }
0x1871   : > { %v2398_v17 = vpop.f32.mrb[46].mxu1 }
0x1872   : > { %v2401_v19 = vmax.f32 %v2396_v13, 0.0  ;;  %v3044_v20 = vpop.f32.mrb[47].mxu1 }
0x1874   : > { %v2402_v22 = vpack.c.bf16 %v2401_v19, %v2401_v19 }
0x1876   : > { %3062 = vmatmul.mubr.bf16.vlgmr.msra.gmra.mrb[32].mxu0 %v2402_v22 }
0x1949   : > { %v2504_v32 = vpop.f32.mrb[32].mxu0 }
0x194a   : > { %v2505_v40 = vadd.f32 %v2504_v32, %v2468_v23  ;;  %v3063_v15 = vpop.f32.mrb[33].mxu0 }
0x194b   : > { %v2507_v18 = vpop.f32.mrb[34].mxu0 }
0x194c   : > { %2510 = vst [vmem:[%s459_s27] sm:$0x1] %v2505_v40  ;;  %v3064_v48 = vpop.f32.mrb[35].mxu0 }
0x194d   : > { %3254 = shalt.err (!%p3251_p3)
}
0x194e   : > { %s3255_s25 = scalar_lea.hbm %s3994_s1, 16  ;;  %s3259_s0 = scalar_lea.hbm %s4050_s14, 32 }
0x194f   : > { %p3256_p4 = scmp.ne.s32.totalorder %s3994_s1, %s3255_s25  ;;  %p3260_p9 = scmp.lt.u32.totalorder %s3994_s1, %s4050_s14 }
0x1950   : > { %p3261_p10 = scmp.lt.u32.totalorder %s3259_s0, %s3255_s25  ;;  %p3263_p12 = scmp.lt.u32.totalorder %s3255_s25, %s3994_s1 }
0x1951   : > { %p3257_p7 = pnand %p3256_p4, %p3425_p5 }
0x1952   : > { %p3262_p11 = por %p3261_p10, %p3260_p9 }
0x1953   : > { %p3258_p8 = pneg %p3257_p7 }
0x1954   : > { %p3264_p13 = por %p3263_p12, %p3262_p11 }
0x1956   : > { %p3265_p0 = pnand %p3264_p13, %p3258_p8 }
0x1958   : > { %3268 = shalt.err (!%p3265_p0)
}
0x1959   : > { %3065 = dma.vmem_to_hbm [thread:$0]  (%p3425_p5), %s3996_s28, 16, %s3994_s1, %s2512_s22  }
0x195a PF: > { %p3071_p1 = scmp.ge.s32.totalorder %s3303_s16, 2  ;;  %s2536_s17 = sand.u32 1, %s3291_s29  }
0x195b   : > { %s2537_s18 = scalar_lea.sflag [#allocation4], %s2536_s17 }
0x195c   : > { %p3068_p2 = pnand %p3071_p1, %p3429_p6 }
0x195e   : > { %3286 = dma.done.wait (!%p3068_p2), %s2537_s18, 16  }
0x195f   : > { %3288 = vsyncadd (!%p3068_p2), %s2537_s18, 4294967280  ;;  %s4061_s25 = sld [smem:[#allocation6_spill]]  ;;  %p24_p3 = scmp.ge.s32.totalorder %s3412_s19, 4  }
0x1960   : > { %s4062_s29 = smov %s3295_s30  ;;  %s4063_s30 = smov %s3299_s15 }
0x1961   : > { %s4065_s16 = smov %s3412_s19  ;;  %26 = sbr.rel (!%p24_p3) target bundleno = 6 (0x6), region = 119 }
0x1965   : > { %s4064_s15 = smov %s4061_s25 }
0x1968   :  { %2541 = vsyncpa [#allocation4], 1 }
0x1969   :  { %2543 = vsyncpa [#allocation4 + $0x1], 1 }

</bundles_post_ra>
